<compile_context>
chip_gen: v5e
topology: v5e:2x2
jax: 0.10.0
libtpu: 0.0.40
codegen_flags: <defaults>
</compile_context>

<pallas_src>
import numpy as np

import jax
import jax.numpy as jnp
from jax import lax
from jax.experimental import pallas as pl
from jax.experimental.pallas import tpu as pltpu


# ------------------------------ fused kernel -------------------------------

def _lenet_kernel(x_ref, b1m_ref, b1b_ref, r1_ref, b2m_ref, b2b_ref,
                  w1z_ref, f1b_ref, f2w_ref, f2b_ref, f3w_ref, f3b_ref,
                  out_ref):
    f32 = jnp.float32
    bf16 = jnp.bfloat16

    x = x_ref[...]                                          # (32, 32) f32

    # conv1 + bias + ReLU  ->  y1[h, 6*w + o], shape (28, 168)
    y1 = jnp.zeros((28, 168), f32)
    for kh in range(5):
        y1 = y1 + jnp.dot(x[kh:kh + 28, :].astype(bf16), b1m_ref[kh],
                          preferred_element_type=f32)
    y1 = jnp.maximum(y1 + b1b_ref[...], 0.0)

    # 2x2/2 max-pool: shifted maxima + row compaction -> p1[i, 12*j + c], (14, 162)
    rmax = jnp.maximum(y1[0:27, :], y1[1:28, :])            # rows h and h+1
    wmax = jnp.maximum(rmax[:, 0:162], rmax[:, 6:168])      # cols w and w+1
    p1 = jnp.dot(r1_ref[...], wmax, preferred_element_type=f32)

    # conv2 + bias + ReLU  ->  y2[oh, 16*ow + o], shape (10, 160)
    y2 = jnp.zeros((10, 160), f32)
    for kh in range(5):
        y2 = y2 + jnp.dot(p1[kh:kh + 10, :].astype(bf16), b2m_ref[kh],
                          preferred_element_type=f32)
    y2 = jnp.maximum(y2 + b2b_ref[...], 0.0)

    # 2x2/2 max-pool: valid entries land at z2[2*i, 32*j + o], shape (9, 144)
    rmax2 = jnp.maximum(y2[0:9, :], y2[1:10, :])
    z2 = jnp.maximum(rmax2[:, 0:144], rmax2[:, 16:160])

    # fc1 (+ReLU): PyTorch's (16,5,5)->400 flatten is folded into W1z
    h1 = f1b_ref[...]                                       # (1, 120)
    for i in range(5):
        h1 = h1 + jnp.dot(z2[2 * i:2 * i + 1, :].astype(bf16), w1z_ref[i],
                          preferred_element_type=f32)
    h1 = jnp.maximum(h1, 0.0)

    # fc2 (+ReLU) and fc3
    h2 = jnp.dot(h1.astype(bf16), f2w_ref[...], preferred_element_type=f32)
    h2 = jnp.maximum(h2 + f2b_ref[...], 0.0)
    out = jnp.dot(h2.astype(bf16), f3w_ref[...], preferred_element_type=f32)
    out_ref[...] = out + f3b_ref[...]


# -------------------- one-time host-side weight repacking ------------------

def prepare_operands(p):
    """Repack PyTorch-layout parameters into MXU-friendly banded / permuted
    matrices used by the fused kernel (numpy, done once at init)."""
    w1 = np.asarray(p["c1w"], np.float32)    # (6, 1, 5, 5)
    b1 = np.asarray(p["c1b"], np.float32)    # (6,)
    w2 = np.asarray(p["c2w"], np.float32)    # (16, 6, 5, 5)
    b2 = np.asarray(p["c2b"], np.float32)    # (16,)
    f1w = np.asarray(p["f1w"], np.float32)   # (120, 400)
    f1b = np.asarray(p["f1b"], np.float32)   # (120,)
    f2w = np.asarray(p["f2w"], np.float32)   # (84, 120)
    f2b = np.asarray(p["f2b"], np.float32)   # (84,)
    f3w = np.asarray(p["f3w"], np.float32)   # (10, 84)
    f3b = np.asarray(p["f3b"], np.float32)   # (10,)

    # conv1 banded weights: y1[h, 6*w + o] = sum_kh (x[h+kh, :] @ B1[kh])[6*w + o]
    B1 = np.zeros((5, 32, 28 * 6), np.float32)
    for kh in range(5):
        for kw in range(5):
            for w in range(28):
                B1[kh, w + kw, 6 * w:6 * w + 6] = w1[:, 0, kh, kw]

    # pool1 row-compaction matrix: picks rows 0, 2, ..., 26 out of 27
    R1 = np.zeros((14, 27), np.float32)
    R1[np.arange(14), 2 * np.arange(14)] = 1.0

    # conv2 banded weights over the pooled layout p1[i, 12*j + c]
    B2 = np.zeros((5, 162, 160), np.float32)
    for kh in range(5):
        for kw in range(5):
            for ow in range(10):
                r = 12 * (ow + kw)
                B2[kh, r:r + 6, 16 * ow:16 * ow + 16] = w2[:, :, kh, kw].T

    # fc1 weights permuted onto the pooled conv2 layout z2[2*i, 32*j + o];
    # this absorbs PyTorch's NCHW .view(-1, 400) flatten order (c, h, w).
    f1w_r = f1w.reshape(120, 16, 5, 5)
    W1z = np.zeros((5, 144, 120), np.float32)
    for i in range(5):
        for j in range(5):
            W1z[i, 32 * j:32 * j + 16, :] = f1w_r[:, :, i, j].T

    bf16, f32 = jnp.bfloat16, jnp.float32
    return {
        "B1": jnp.asarray(B1, bf16),
        "b1row": jnp.asarray(np.tile(b1, 28)[None, :], f32),     # (1, 168)
        "R1": jnp.asarray(R1, f32),
        "B2": jnp.asarray(B2, bf16),
        "b2row": jnp.asarray(np.tile(b2, 10)[None, :], f32),     # (1, 160)
        "W1z": jnp.asarray(W1z, bf16),
        "f1b": jnp.asarray(f1b[None, :], f32),                   # (1, 120)
        "f2w": jnp.asarray(f2w.T, bf16),                         # (120, 84)
        "f2b": jnp.asarray(f2b[None, :], f32),                   # (1, 84)
        "f3w": jnp.asarray(f3w.T, bf16),                         # (84, 10)
        "f3b": jnp.asarray(f3b[None, :], f32),                   # (1, 10)
    }


# ------------------------------- forward -----------------------------------

@jax.jit
def net_forward(x_nchw, ops):
    """Fused LeNet forward: x (B, 1, 32, 32) f32 -> logits (B, 10) f32."""
    B = x_nchw.shape[0]

    def _full(arr):
        nd = arr.ndim
        return pl.BlockSpec(arr.shape, lambda b, nd=nd: (0,) * nd)

    out = pl.pallas_call(
        _lenet_kernel,
        out_shape=jax.ShapeDtypeStruct((B, 1, 10), jnp.float32),
        grid=(B,),
        in_specs=[
            pl.BlockSpec((None, None, 32, 32), lambda b: (b, 0, 0, 0)),
            _full(ops["B1"]), _full(ops["b1row"]), _full(ops["R1"]),
            _full(ops["B2"]), _full(ops["b2row"]),
            _full(ops["W1z"]), _full(ops["f1b"]),
            _full(ops["f2w"]), _full(ops["f2b"]),
            _full(ops["f3w"]), _full(ops["f3b"]),
        ],
        out_specs=pl.BlockSpec((None, 1, 10), lambda b: (b, 0, 0)),
        compiler_params=pltpu.CompilerParams(
            dimension_semantics=("parallel",)),
    )(x_nchw, ops["B1"], ops["b1row"], ops["R1"], ops["B2"], ops["b2row"],
      ops["W1z"], ops["f1b"], ops["f2w"], ops["f2b"], ops["f3w"], ops["f3b"])
    return out[:, 0, :]


# ------------------------- pure-JAX reference ------------------------------

def net_reference(x, p):
    dn = ("NCHW", "OIHW", "NCHW")
    y = lax.conv_general_dilated(x, p["c1w"], (1, 1), "VALID",
                                 dimension_numbers=dn) + p["c1b"].reshape(1, -1, 1, 1)
    y = jnp.maximum(y, 0.0)
    y = lax.reduce_window(y, -jnp.inf, lax.max, (1, 1, 2, 2), (1, 1, 2, 2), "VALID")
    y = lax.conv_general_dilated(y, p["c2w"], (1, 1), "VALID",
                                 dimension_numbers=dn) + p["c2b"].reshape(1, -1, 1, 1)
    y = jnp.maximum(y, 0.0)
    y = lax.reduce_window(y, -jnp.inf, lax.max, (1, 1, 2, 2), (1, 1, 2, 2), "VALID")
    y = y.reshape(y.shape[0], -1)
    y = jnp.maximum(y @ p["f1w"].T + p["f1b"], 0.0)
    y = jnp.maximum(y @ p["f2w"].T + p["f2b"], 0.0)
    return y @ p["f3w"].T + p["f3b"]


def init_params():
    keys = jax.random.split(jax.random.PRNGKey(0), 10)
    n = lambda k, s, sc: (jax.random.normal(k, s, jnp.float32) * sc)
    return {
        "c1w": n(keys[0], (6, 1, 5, 5), 0.1),   "c1b": n(keys[1], (6,), 0.1),
        "c2w": n(keys[2], (16, 6, 5, 5), 0.1),  "c2b": n(keys[3], (16,), 0.1),
        "f1w": n(keys[4], (120, 400), 0.05),    "f1b": n(keys[5], (120,), 0.1),
        "f2w": n(keys[6], (84, 120), 0.05),     "f2b": n(keys[7], (84,), 0.1),
        "f3w": n(keys[8], (10, 84), 0.05),      "f3b": n(keys[9], (10,), 0.1),
    }


if __name__ == "__main__":
    params = init_params()
    ops = prepare_operands(params)
    x = jax.random.normal(jax.random.PRNGKey(0), (2, 1, 32, 32), jnp.float32)

    out = jax.block_until_ready(net_forward(x, ops))
    ref = jax.block_until_ready(net_reference(x, params))

    assert out.shape == (2, 10), out.shape
    # bf16 MXU operands with f32 accumulation -> a couple of 1e-3 abs error.
    assert jnp.allclose(out, ref, atol=2e-2, rtol=2e-2), (out, ref)
    print("KERNEL_OK")
</pallas_src>

<mosaic_0001>
module attributes {stable_mosaic.version = 11 : i64} {
  func.func @_lenet_kernel(%arg0: i32, %arg1: memref<1x1x32x32xf32, #tpu.memory_space<vmem>>, %arg2: memref<5x32x168xbf16, #tpu.memory_space<vmem>>, %arg3: memref<1x168xf32, #tpu.memory_space<vmem>>, %arg4: memref<14x27xf32, #tpu.memory_space<vmem>>, %arg5: memref<5x162x160xbf16, #tpu.memory_space<vmem>>, %arg6: memref<1x160xf32, #tpu.memory_space<vmem>>, %arg7: memref<5x144x120xbf16, #tpu.memory_space<vmem>>, %arg8: memref<1x120xf32, #tpu.memory_space<vmem>>, %arg9: memref<120x84xbf16, #tpu.memory_space<vmem>>, %arg10: memref<1x84xf32, #tpu.memory_space<vmem>>, %arg11: memref<84x10xbf16, #tpu.memory_space<vmem>>, %arg12: memref<1x10xf32, #tpu.memory_space<vmem>>, %arg13: memref<1x1x10xf32, #tpu.memory_space<vmem>>) attributes {dimension_semantics = [#tpu.dimension_semantics<parallel>], iteration_bounds = array<i64: 2>, scalar_prefetch = 0 : i64, scratch_operands = 0 : i64, tpu.core_type = #tpu.core_type<tc>, window_params = [{transform_indices = @transform_0, window_bounds = array<i64: 1, 1, 32, 32>}, {pipeline_mode = #tpu.pipeline_mode<synchronous>, transform_indices = @transform_1, window_bounds = array<i64: 5, 32, 168>}, {pipeline_mode = #tpu.pipeline_mode<synchronous>, transform_indices = @transform_2, window_bounds = array<i64: 1, 168>}, {pipeline_mode = #tpu.pipeline_mode<synchronous>, transform_indices = @transform_3, window_bounds = array<i64: 14, 27>}, {pipeline_mode = #tpu.pipeline_mode<synchronous>, transform_indices = @transform_4, window_bounds = array<i64: 5, 162, 160>}, {pipeline_mode = #tpu.pipeline_mode<synchronous>, transform_indices = @transform_5, window_bounds = array<i64: 1, 160>}, {pipeline_mode = #tpu.pipeline_mode<synchronous>, transform_indices = @transform_6, window_bounds = array<i64: 5, 144, 120>}, {pipeline_mode = #tpu.pipeline_mode<synchronous>, transform_indices = @transform_7, window_bounds = array<i64: 1, 120>}, {pipeline_mode = #tpu.pipeline_mode<synchronous>, transform_indices = @transform_8, window_bounds = array<i64: 120, 84>}, {pipeline_mode = #tpu.pipeline_mode<synchronous>, transform_indices = @transform_9, window_bounds = array<i64: 1, 84>}, {pipeline_mode = #tpu.pipeline_mode<synchronous>, transform_indices = @transform_10, window_bounds = array<i64: 84, 10>}, {pipeline_mode = #tpu.pipeline_mode<synchronous>, transform_indices = @transform_11, window_bounds = array<i64: 1, 10>}, {transform_indices = @transform_12, window_bounds = array<i64: 1, 1, 10>}]} {
    %c0 = arith.constant 0 : index
    %c0_0 = arith.constant 0 : index
    %c0_1 = arith.constant 0 : index
    %c0_2 = arith.constant 0 : index
    %0 = vector.load %arg1[%c0, %c0_0, %c0_1, %c0_2] : memref<1x1x32x32xf32, #tpu.memory_space<vmem>>, vector<1x1x32x32xf32>
    %1 = vector.shape_cast %0 : vector<1x1x32x32xf32> to vector<32x32xf32>
    %cst = arith.constant 0.000000e+00 : f32
    %2 = vector.broadcast %cst : f32 to vector<28x168xf32>
    %3 = vector.extract_strided_slice %1 {offsets = [0, 0], sizes = [28, 32], strides = [1, 1]} : vector<32x32xf32> to vector<28x32xf32>
    %4 = arith.truncf %3 : vector<28x32xf32> to vector<28x32xbf16>
    %c0_3 = arith.constant 0 : index
    %c0_4 = arith.constant 0 : index
    %c0_5 = arith.constant 0 : index
    %5 = vector.load %arg2[%c0_3, %c0_4, %c0_5] : memref<5x32x168xbf16, #tpu.memory_space<vmem>>, vector<1x32x168xbf16>
    %6 = vector.shape_cast %5 : vector<1x32x168xbf16> to vector<32x168xbf16>
    %cst_6 = arith.constant dense<0.000000e+00> : vector<28x168xf32>
    %7 = tpu.matmul %4, %6, %cst_6 {dimension_numbers = #tpu.dot_dimension_numbers<[1], [0], [0], [1], [0, 0, 1, 1], [], []>} : vector<28x32xbf16>, vector<32x168xbf16>, vector<28x168xf32> -> vector<28x168xf32>
    %8 = arith.addf %2, %7 : vector<28x168xf32>
    %9 = vector.extract_strided_slice %1 {offsets = [1, 0], sizes = [28, 32], strides = [1, 1]} : vector<32x32xf32> to vector<28x32xf32>
    %10 = arith.truncf %9 : vector<28x32xf32> to vector<28x32xbf16>
    %c1 = arith.constant 1 : index
    %c0_7 = arith.constant 0 : index
    %c0_8 = arith.constant 0 : index
    %11 = vector.load %arg2[%c1, %c0_7, %c0_8] : memref<5x32x168xbf16, #tpu.memory_space<vmem>>, vector<1x32x168xbf16>
    %12 = vector.shape_cast %11 : vector<1x32x168xbf16> to vector<32x168xbf16>
    %cst_9 = arith.constant dense<0.000000e+00> : vector<28x168xf32>
    %13 = tpu.matmul %10, %12, %cst_9 {dimension_numbers = #tpu.dot_dimension_numbers<[1], [0], [0], [1], [0, 0, 1, 1], [], []>} : vector<28x32xbf16>, vector<32x168xbf16>, vector<28x168xf32> -> vector<28x168xf32>
    %14 = arith.addf %8, %13 : vector<28x168xf32>
    %15 = vector.extract_strided_slice %1 {offsets = [2, 0], sizes = [28, 32], strides = [1, 1]} : vector<32x32xf32> to vector<28x32xf32>
    %16 = arith.truncf %15 : vector<28x32xf32> to vector<28x32xbf16>
    %c2 = arith.constant 2 : index
    %c0_10 = arith.constant 0 : index
    %c0_11 = arith.constant 0 : index
    %17 = vector.load %arg2[%c2, %c0_10, %c0_11] : memref<5x32x168xbf16, #tpu.memory_space<vmem>>, vector<1x32x168xbf16>
    %18 = vector.shape_cast %17 : vector<1x32x168xbf16> to vector<32x168xbf16>
    %cst_12 = arith.constant dense<0.000000e+00> : vector<28x168xf32>
    %19 = tpu.matmul %16, %18, %cst_12 {dimension_numbers = #tpu.dot_dimension_numbers<[1], [0], [0], [1], [0, 0, 1, 1], [], []>} : vector<28x32xbf16>, vector<32x168xbf16>, vector<28x168xf32> -> vector<28x168xf32>
    %20 = arith.addf %14, %19 : vector<28x168xf32>
    %21 = vector.extract_strided_slice %1 {offsets = [3, 0], sizes = [28, 32], strides = [1, 1]} : vector<32x32xf32> to vector<28x32xf32>
    %22 = arith.truncf %21 : vector<28x32xf32> to vector<28x32xbf16>
    %c3 = arith.constant 3 : index
    %c0_13 = arith.constant 0 : index
    %c0_14 = arith.constant 0 : index
    %23 = vector.load %arg2[%c3, %c0_13, %c0_14] : memref<5x32x168xbf16, #tpu.memory_space<vmem>>, vector<1x32x168xbf16>
    %24 = vector.shape_cast %23 : vector<1x32x168xbf16> to vector<32x168xbf16>
    %cst_15 = arith.constant dense<0.000000e+00> : vector<28x168xf32>
    %25 = tpu.matmul %22, %24, %cst_15 {dimension_numbers = #tpu.dot_dimension_numbers<[1], [0], [0], [1], [0, 0, 1, 1], [], []>} : vector<28x32xbf16>, vector<32x168xbf16>, vector<28x168xf32> -> vector<28x168xf32>
    %26 = arith.addf %20, %25 : vector<28x168xf32>
    %27 = vector.extract_strided_slice %1 {offsets = [4, 0], sizes = [28, 32], strides = [1, 1]} : vector<32x32xf32> to vector<28x32xf32>
    %28 = arith.truncf %27 : vector<28x32xf32> to vector<28x32xbf16>
    %c4 = arith.constant 4 : index
    %c0_16 = arith.constant 0 : index
    %c0_17 = arith.constant 0 : index
    %29 = vector.load %arg2[%c4, %c0_16, %c0_17] : memref<5x32x168xbf16, #tpu.memory_space<vmem>>, vector<1x32x168xbf16>
    %30 = vector.shape_cast %29 : vector<1x32x168xbf16> to vector<32x168xbf16>
    %cst_18 = arith.constant dense<0.000000e+00> : vector<28x168xf32>
    %31 = tpu.matmul %28, %30, %cst_18 {dimension_numbers = #tpu.dot_dimension_numbers<[1], [0], [0], [1], [0, 0, 1, 1], [], []>} : vector<28x32xbf16>, vector<32x168xbf16>, vector<28x168xf32> -> vector<28x168xf32>
    %32 = arith.addf %26, %31 : vector<28x168xf32>
    %c0_19 = arith.constant 0 : index
    %c0_20 = arith.constant 0 : index
    %33 = vector.load %arg3[%c0_19, %c0_20] : memref<1x168xf32, #tpu.memory_space<vmem>>, vector<1x168xf32>
    %34 = vector.broadcast %33 : vector<1x168xf32> to vector<28x168xf32>
    %35 = arith.addf %32, %34 : vector<28x168xf32>
    %cst_21 = arith.constant 0.000000e+00 : f32
    %36 = vector.broadcast %cst_21 : f32 to vector<28x168xf32>
    %37 = arith.maximumf %35, %36 : vector<28x168xf32>
    %38 = vector.extract_strided_slice %37 {offsets = [0, 0], sizes = [27, 168], strides = [1, 1]} : vector<28x168xf32> to vector<27x168xf32>
    %39 = vector.extract_strided_slice %37 {offsets = [1, 0], sizes = [27, 168], strides = [1, 1]} : vector<28x168xf32> to vector<27x168xf32>
    %40 = arith.maximumf %38, %39 : vector<27x168xf32>
    %41 = vector.extract_strided_slice %40 {offsets = [0, 0], sizes = [27, 162], strides = [1, 1]} : vector<27x168xf32> to vector<27x162xf32>
    %42 = vector.extract_strided_slice %40 {offsets = [0, 6], sizes = [27, 162], strides = [1, 1]} : vector<27x168xf32> to vector<27x162xf32>
    %43 = arith.maximumf %41, %42 : vector<27x162xf32>
    %c0_22 = arith.constant 0 : index
    %c0_23 = arith.constant 0 : index
    %44 = vector.load %arg4[%c0_22, %c0_23] : memref<14x27xf32, #tpu.memory_space<vmem>>, vector<14x27xf32>
    %cst_24 = arith.constant dense<0.000000e+00> : vector<14x162xf32>
    %45 = tpu.matmul %44, %43, %cst_24 {dimension_numbers = #tpu.dot_dimension_numbers<[1], [0], [0], [1], [0, 0, 1, 1], [], []>} : vector<14x27xf32>, vector<27x162xf32>, vector<14x162xf32> -> vector<14x162xf32>
    %cst_25 = arith.constant 0.000000e+00 : f32
    %46 = vector.broadcast %cst_25 : f32 to vector<10x160xf32>
    %47 = vector.extract_strided_slice %45 {offsets = [0, 0], sizes = [10, 162], strides = [1, 1]} : vector<14x162xf32> to vector<10x162xf32>
    %48 = arith.truncf %47 : vector<10x162xf32> to vector<10x162xbf16>
    %c0_26 = arith.constant 0 : index
    %c0_27 = arith.constant 0 : index
    %c0_28 = arith.constant 0 : index
    %49 = vector.load %arg5[%c0_26, %c0_27, %c0_28] : memref<5x162x160xbf16, #tpu.memory_space<vmem>>, vector<1x162x160xbf16>
    %50 = vector.shape_cast %49 : vector<1x162x160xbf16> to vector<162x160xbf16>
    %cst_29 = arith.constant dense<0.000000e+00> : vector<10x160xf32>
    %51 = tpu.matmul %48, %50, %cst_29 {dimension_numbers = #tpu.dot_dimension_numbers<[1], [0], [0], [1], [0, 0, 1, 1], [], []>} : vector<10x162xbf16>, vector<162x160xbf16>, vector<10x160xf32> -> vector<10x160xf32>
    %52 = arith.addf %46, %51 : vector<10x160xf32>
    %53 = vector.extract_strided_slice %45 {offsets = [1, 0], sizes = [10, 162], strides = [1, 1]} : vector<14x162xf32> to vector<10x162xf32>
    %54 = arith.truncf %53 : vector<10x162xf32> to vector<10x162xbf16>
    %c1_30 = arith.constant 1 : index
    %c0_31 = arith.constant 0 : index
    %c0_32 = arith.constant 0 : index
    %55 = vector.load %arg5[%c1_30, %c0_31, %c0_32] : memref<5x162x160xbf16, #tpu.memory_space<vmem>>, vector<1x162x160xbf16>
    %56 = vector.shape_cast %55 : vector<1x162x160xbf16> to vector<162x160xbf16>
    %cst_33 = arith.constant dense<0.000000e+00> : vector<10x160xf32>
    %57 = tpu.matmul %54, %56, %cst_33 {dimension_numbers = #tpu.dot_dimension_numbers<[1], [0], [0], [1], [0, 0, 1, 1], [], []>} : vector<10x162xbf16>, vector<162x160xbf16>, vector<10x160xf32> -> vector<10x160xf32>
    %58 = arith.addf %52, %57 : vector<10x160xf32>
    %59 = vector.extract_strided_slice %45 {offsets = [2, 0], sizes = [10, 162], strides = [1, 1]} : vector<14x162xf32> to vector<10x162xf32>
    %60 = arith.truncf %59 : vector<10x162xf32> to vector<10x162xbf16>
    %c2_34 = arith.constant 2 : index
    %c0_35 = arith.constant 0 : index
    %c0_36 = arith.constant 0 : index
    %61 = vector.load %arg5[%c2_34, %c0_35, %c0_36] : memref<5x162x160xbf16, #tpu.memory_space<vmem>>, vector<1x162x160xbf16>
    %62 = vector.shape_cast %61 : vector<1x162x160xbf16> to vector<162x160xbf16>
    %cst_37 = arith.constant dense<0.000000e+00> : vector<10x160xf32>
    %63 = tpu.matmul %60, %62, %cst_37 {dimension_numbers = #tpu.dot_dimension_numbers<[1], [0], [0], [1], [0, 0, 1, 1], [], []>} : vector<10x162xbf16>, vector<162x160xbf16>, vector<10x160xf32> -> vector<10x160xf32>
    %64 = arith.addf %58, %63 : vector<10x160xf32>
    %65 = vector.extract_strided_slice %45 {offsets = [3, 0], sizes = [10, 162], strides = [1, 1]} : vector<14x162xf32> to vector<10x162xf32>
    %66 = arith.truncf %65 : vector<10x162xf32> to vector<10x162xbf16>
    %c3_38 = arith.constant 3 : index
    %c0_39 = arith.constant 0 : index
    %c0_40 = arith.constant 0 : index
    %67 = vector.load %arg5[%c3_38, %c0_39, %c0_40] : memref<5x162x160xbf16, #tpu.memory_space<vmem>>, vector<1x162x160xbf16>
    %68 = vector.shape_cast %67 : vector<1x162x160xbf16> to vector<162x160xbf16>
    %cst_41 = arith.constant dense<0.000000e+00> : vector<10x160xf32>
    %69 = tpu.matmul %66, %68, %cst_41 {dimension_numbers = #tpu.dot_dimension_numbers<[1], [0], [0], [1], [0, 0, 1, 1], [], []>} : vector<10x162xbf16>, vector<162x160xbf16>, vector<10x160xf32> -> vector<10x160xf32>
    %70 = arith.addf %64, %69 : vector<10x160xf32>
    %71 = vector.extract_strided_slice %45 {offsets = [4, 0], sizes = [10, 162], strides = [1, 1]} : vector<14x162xf32> to vector<10x162xf32>
    %72 = arith.truncf %71 : vector<10x162xf32> to vector<10x162xbf16>
    %c4_42 = arith.constant 4 : index
    %c0_43 = arith.constant 0 : index
    %c0_44 = arith.constant 0 : index
    %73 = vector.load %arg5[%c4_42, %c0_43, %c0_44] : memref<5x162x160xbf16, #tpu.memory_space<vmem>>, vector<1x162x160xbf16>
    %74 = vector.shape_cast %73 : vector<1x162x160xbf16> to vector<162x160xbf16>
    %cst_45 = arith.constant dense<0.000000e+00> : vector<10x160xf32>
    %75 = tpu.matmul %72, %74, %cst_45 {dimension_numbers = #tpu.dot_dimension_numbers<[1], [0], [0], [1], [0, 0, 1, 1], [], []>} : vector<10x162xbf16>, vector<162x160xbf16>, vector<10x160xf32> -> vector<10x160xf32>
    %76 = arith.addf %70, %75 : vector<10x160xf32>
    %c0_46 = arith.constant 0 : index
    %c0_47 = arith.constant 0 : index
    %77 = vector.load %arg6[%c0_46, %c0_47] : memref<1x160xf32, #tpu.memory_space<vmem>>, vector<1x160xf32>
    %78 = vector.broadcast %77 : vector<1x160xf32> to vector<10x160xf32>
    %79 = arith.addf %76, %78 : vector<10x160xf32>
    %cst_48 = arith.constant 0.000000e+00 : f32
    %80 = vector.broadcast %cst_48 : f32 to vector<10x160xf32>
    %81 = arith.maximumf %79, %80 : vector<10x160xf32>
    %82 = vector.extract_strided_slice %81 {offsets = [0, 0], sizes = [9, 160], strides = [1, 1]} : vector<10x160xf32> to vector<9x160xf32>
    %83 = vector.extract_strided_slice %81 {offsets = [1, 0], sizes = [9, 160], strides = [1, 1]} : vector<10x160xf32> to vector<9x160xf32>
    %84 = arith.maximumf %82, %83 : vector<9x160xf32>
    %85 = vector.extract_strided_slice %84 {offsets = [0, 0], sizes = [9, 144], strides = [1, 1]} : vector<9x160xf32> to vector<9x144xf32>
    %86 = vector.extract_strided_slice %84 {offsets = [0, 16], sizes = [9, 144], strides = [1, 1]} : vector<9x160xf32> to vector<9x144xf32>
    %87 = arith.maximumf %85, %86 : vector<9x144xf32>
    %c0_49 = arith.constant 0 : index
    %c0_50 = arith.constant 0 : index
    %88 = vector.load %arg8[%c0_49, %c0_50] : memref<1x120xf32, #tpu.memory_space<vmem>>, vector<1x120xf32>
    %89 = vector.extract_strided_slice %87 {offsets = [0, 0], sizes = [1, 144], strides = [1, 1]} : vector<9x144xf32> to vector<1x144xf32>
    %90 = arith.truncf %89 : vector<1x144xf32> to vector<1x144xbf16>
    %c0_51 = arith.constant 0 : index
    %c0_52 = arith.constant 0 : index
    %c0_53 = arith.constant 0 : index
    %91 = vector.load %arg7[%c0_51, %c0_52, %c0_53] : memref<5x144x120xbf16, #tpu.memory_space<vmem>>, vector<1x144x120xbf16>
    %92 = vector.shape_cast %91 : vector<1x144x120xbf16> to vector<144x120xbf16>
    %cst_54 = arith.constant dense<0.000000e+00> : vector<1x120xf32>
    %93 = tpu.matmul %90, %92, %cst_54 {dimension_numbers = #tpu.dot_dimension_numbers<[1], [0], [0], [1], [0, 0, 1, 1], [], []>} : vector<1x144xbf16>, vector<144x120xbf16>, vector<1x120xf32> -> vector<1x120xf32>
    %94 = arith.addf %88, %93 : vector<1x120xf32>
    %95 = vector.extract_strided_slice %87 {offsets = [2, 0], sizes = [1, 144], strides = [1, 1]} : vector<9x144xf32> to vector<1x144xf32>
    %96 = arith.truncf %95 : vector<1x144xf32> to vector<1x144xbf16>
    %c1_55 = arith.constant 1 : index
    %c0_56 = arith.constant 0 : index
    %c0_57 = arith.constant 0 : index
    %97 = vector.load %arg7[%c1_55, %c0_56, %c0_57] : memref<5x144x120xbf16, #tpu.memory_space<vmem>>, vector<1x144x120xbf16>
    %98 = vector.shape_cast %97 : vector<1x144x120xbf16> to vector<144x120xbf16>
    %cst_58 = arith.constant dense<0.000000e+00> : vector<1x120xf32>
    %99 = tpu.matmul %96, %98, %cst_58 {dimension_numbers = #tpu.dot_dimension_numbers<[1], [0], [0], [1], [0, 0, 1, 1], [], []>} : vector<1x144xbf16>, vector<144x120xbf16>, vector<1x120xf32> -> vector<1x120xf32>
    %100 = arith.addf %94, %99 : vector<1x120xf32>
    %101 = vector.extract_strided_slice %87 {offsets = [4, 0], sizes = [1, 144], strides = [1, 1]} : vector<9x144xf32> to vector<1x144xf32>
    %102 = arith.truncf %101 : vector<1x144xf32> to vector<1x144xbf16>
    %c2_59 = arith.constant 2 : index
    %c0_60 = arith.constant 0 : index
    %c0_61 = arith.constant 0 : index
    %103 = vector.load %arg7[%c2_59, %c0_60, %c0_61] : memref<5x144x120xbf16, #tpu.memory_space<vmem>>, vector<1x144x120xbf16>
    %104 = vector.shape_cast %103 : vector<1x144x120xbf16> to vector<144x120xbf16>
    %cst_62 = arith.constant dense<0.000000e+00> : vector<1x120xf32>
    %105 = tpu.matmul %102, %104, %cst_62 {dimension_numbers = #tpu.dot_dimension_numbers<[1], [0], [0], [1], [0, 0, 1, 1], [], []>} : vector<1x144xbf16>, vector<144x120xbf16>, vector<1x120xf32> -> vector<1x120xf32>
    %106 = arith.addf %100, %105 : vector<1x120xf32>
    %107 = vector.extract_strided_slice %87 {offsets = [6, 0], sizes = [1, 144], strides = [1, 1]} : vector<9x144xf32> to vector<1x144xf32>
    %108 = arith.truncf %107 : vector<1x144xf32> to vector<1x144xbf16>
    %c3_63 = arith.constant 3 : index
    %c0_64 = arith.constant 0 : index
    %c0_65 = arith.constant 0 : index
    %109 = vector.load %arg7[%c3_63, %c0_64, %c0_65] : memref<5x144x120xbf16, #tpu.memory_space<vmem>>, vector<1x144x120xbf16>
    %110 = vector.shape_cast %109 : vector<1x144x120xbf16> to vector<144x120xbf16>
    %cst_66 = arith.constant dense<0.000000e+00> : vector<1x120xf32>
    %111 = tpu.matmul %108, %110, %cst_66 {dimension_numbers = #tpu.dot_dimension_numbers<[1], [0], [0], [1], [0, 0, 1, 1], [], []>} : vector<1x144xbf16>, vector<144x120xbf16>, vector<1x120xf32> -> vector<1x120xf32>
    %112 = arith.addf %106, %111 : vector<1x120xf32>
    %113 = vector.extract_strided_slice %87 {offsets = [8, 0], sizes = [1, 144], strides = [1, 1]} : vector<9x144xf32> to vector<1x144xf32>
    %114 = arith.truncf %113 : vector<1x144xf32> to vector<1x144xbf16>
    %c4_67 = arith.constant 4 : index
    %c0_68 = arith.constant 0 : index
    %c0_69 = arith.constant 0 : index
    %115 = vector.load %arg7[%c4_67, %c0_68, %c0_69] : memref<5x144x120xbf16, #tpu.memory_space<vmem>>, vector<1x144x120xbf16>
    %116 = vector.shape_cast %115 : vector<1x144x120xbf16> to vector<144x120xbf16>
    %cst_70 = arith.constant dense<0.000000e+00> : vector<1x120xf32>
    %117 = tpu.matmul %114, %116, %cst_70 {dimension_numbers = #tpu.dot_dimension_numbers<[1], [0], [0], [1], [0, 0, 1, 1], [], []>} : vector<1x144xbf16>, vector<144x120xbf16>, vector<1x120xf32> -> vector<1x120xf32>
    %118 = arith.addf %112, %117 : vector<1x120xf32>
    %cst_71 = arith.constant 0.000000e+00 : f32
    %119 = vector.broadcast %cst_71 : f32 to vector<1x120xf32>
    %120 = arith.maximumf %118, %119 : vector<1x120xf32>
    %121 = arith.truncf %120 : vector<1x120xf32> to vector<1x120xbf16>
    %c0_72 = arith.constant 0 : index
    %c0_73 = arith.constant 0 : index
    %122 = vector.load %arg9[%c0_72, %c0_73] : memref<120x84xbf16, #tpu.memory_space<vmem>>, vector<120x84xbf16>
    %cst_74 = arith.constant dense<0.000000e+00> : vector<1x84xf32>
    %123 = tpu.matmul %121, %122, %cst_74 {dimension_numbers = #tpu.dot_dimension_numbers<[1], [0], [0], [1], [0, 0, 1, 1], [], []>} : vector<1x120xbf16>, vector<120x84xbf16>, vector<1x84xf32> -> vector<1x84xf32>
    %c0_75 = arith.constant 0 : index
    %c0_76 = arith.constant 0 : index
    %124 = vector.load %arg10[%c0_75, %c0_76] : memref<1x84xf32, #tpu.memory_space<vmem>>, vector<1x84xf32>
    %125 = arith.addf %123, %124 : vector<1x84xf32>
    %cst_77 = arith.constant 0.000000e+00 : f32
    %126 = vector.broadcast %cst_77 : f32 to vector<1x84xf32>
    %127 = arith.maximumf %125, %126 : vector<1x84xf32>
    %128 = arith.truncf %127 : vector<1x84xf32> to vector<1x84xbf16>
    %c0_78 = arith.constant 0 : index
    %c0_79 = arith.constant 0 : index
    %129 = vector.load %arg11[%c0_78, %c0_79] : memref<84x10xbf16, #tpu.memory_space<vmem>>, vector<84x10xbf16>
    %cst_80 = arith.constant dense<0.000000e+00> : vector<1x10xf32>
    %130 = tpu.matmul %128, %129, %cst_80 {dimension_numbers = #tpu.dot_dimension_numbers<[1], [0], [0], [1], [0, 0, 1, 1], [], []>} : vector<1x84xbf16>, vector<84x10xbf16>, vector<1x10xf32> -> vector<1x10xf32>
    %c0_81 = arith.constant 0 : index
    %c0_82 = arith.constant 0 : index
    %131 = vector.load %arg12[%c0_81, %c0_82] : memref<1x10xf32, #tpu.memory_space<vmem>>, vector<1x10xf32>
    %132 = arith.addf %130, %131 : vector<1x10xf32>
    %c0_83 = arith.constant 0 : index
    %c0_84 = arith.constant 0 : index
    %c0_85 = arith.constant 0 : index
    %133 = vector.load %arg13[%c0_83, %c0_84, %c0_85] : memref<1x1x10xf32, #tpu.memory_space<vmem>>, vector<1x1x10xf32>
    %134 = vector.shape_cast %133 : vector<1x1x10xf32> to vector<1x10xf32>
    %135 = vector.shape_cast %132 : vector<1x10xf32> to vector<1x1x10xf32>
    tpu.vector_store %arg13[%c0_83, %c0_84, %c0_85], %135 {strides = array<i32>} : memref<1x1x10xf32, #tpu.memory_space<vmem>>, vector<1x1x10xf32>,
    return
  }
  func.func @transform_0(%arg0: i32) -> (i32, i32, i32, i32) {
    %c0_i32 = arith.constant 0 : i32
    %c0_i32_0 = arith.constant 0 : i32
    %c0_i32_1 = arith.constant 0 : i32
    %c0_i32_2 = arith.constant 0 : i32
    return %arg0, %c0_i32, %c0_i32_0, %c0_i32_1 : i32, i32, i32, i32
  }
  func.func @transform_1(%arg0: i32) -> (i32, i32, i32) {
    %c0_i32 = arith.constant 0 : i32
    %c0_i32_0 = arith.constant 0 : i32
    %c0_i32_1 = arith.constant 0 : i32
    %c0_i32_2 = arith.constant 0 : i32
    return %c0_i32, %c0_i32_0, %c0_i32_1 : i32, i32, i32
  }
  func.func @transform_2(%arg0: i32) -> (i32, i32) {
    %c0_i32 = arith.constant 0 : i32
    %c0_i32_0 = arith.constant 0 : i32
    %c0_i32_1 = arith.constant 0 : i32
    return %c0_i32, %c0_i32_0 : i32, i32
  }
  func.func @transform_3(%arg0: i32) -> (i32, i32) {
    %c0_i32 = arith.constant 0 : i32
    %c0_i32_0 = arith.constant 0 : i32
    %c0_i32_1 = arith.constant 0 : i32
    return %c0_i32, %c0_i32_0 : i32, i32
  }
  func.func @transform_4(%arg0: i32) -> (i32, i32, i32) {
    %c0_i32 = arith.constant 0 : i32
    %c0_i32_0 = arith.constant 0 : i32
    %c0_i32_1 = arith.constant 0 : i32
    %c0_i32_2 = arith.constant 0 : i32
    return %c0_i32, %c0_i32_0, %c0_i32_1 : i32, i32, i32
  }
  func.func @transform_5(%arg0: i32) -> (i32, i32) {
    %c0_i32 = arith.constant 0 : i32
    %c0_i32_0 = arith.constant 0 : i32
    %c0_i32_1 = arith.constant 0 : i32
    return %c0_i32, %c0_i32_0 : i32, i32
  }
  func.func @transform_6(%arg0: i32) -> (i32, i32, i32) {
    %c0_i32 = arith.constant 0 : i32
    %c0_i32_0 = arith.constant 0 : i32
    %c0_i32_1 = arith.constant 0 : i32
    %c0_i32_2 = arith.constant 0 : i32
    return %c0_i32, %c0_i32_0, %c0_i32_1 : i32, i32, i32
  }
  func.func @transform_7(%arg0: i32) -> (i32, i32) {
    %c0_i32 = arith.constant 0 : i32
    %c0_i32_0 = arith.constant 0 : i32
    %c0_i32_1 = arith.constant 0 : i32
    return %c0_i32, %c0_i32_0 : i32, i32
  }
  func.func @transform_8(%arg0: i32) -> (i32, i32) {
    %c0_i32 = arith.constant 0 : i32
    %c0_i32_0 = arith.constant 0 : i32
    %c0_i32_1 = arith.constant 0 : i32
    return %c0_i32, %c0_i32_0 : i32, i32
  }
  func.func @transform_9(%arg0: i32) -> (i32, i32) {
    %c0_i32 = arith.constant 0 : i32
    %c0_i32_0 = arith.constant 0 : i32
    %c0_i32_1 = arith.constant 0 : i32
    return %c0_i32, %c0_i32_0 : i32, i32
  }
  func.func @transform_10(%arg0: i32) -> (i32, i32) {
    %c0_i32 = arith.constant 0 : i32
    %c0_i32_0 = arith.constant 0 : i32
    %c0_i32_1 = arith.constant 0 : i32
    return %c0_i32, %c0_i32_0 : i32, i32
  }
  func.func @transform_11(%arg0: i32) -> (i32, i32) {
    %c0_i32 = arith.constant 0 : i32
    %c0_i32_0 = arith.constant 0 : i32
    %c0_i32_1 = arith.constant 0 : i32
    return %c0_i32, %c0_i32_0 : i32, i32
  }
  func.func @transform_12(%arg0: i32) -> (i32, i32, i32) {
    %c0_i32 = arith.constant 0 : i32
    %c0_i32_0 = arith.constant 0 : i32
    %c0_i32_1 = arith.constant 0 : i32
    return %arg0, %c0_i32, %c0_i32_0 : i32, i32, i32
  }
}

</mosaic_0001>

<bundles_post_ra>
// kernel: net_forward.1
= control target key start
LH: loop header
LB: loop body
LE: loop exit
PB: predicated region body
PF: predicated region fallthrough
CT: control target
= control target key end

     0   :  { %17 = vsyncpa [#allocation3], 0  ;;  %s5286_s0 = inlined_call_operand.vmem [shape: f32[2,1,32,32], index: 0, kind: input, shape index: {}]   ;;  %s5287_s1 = inlined_call_operand.vmem [shape: bf16[5,32,168], index: 1, kind: input, shape index: {}]   ;;  %s5288_s2 = inlined_call_operand.vmem [shape: f32[1,168], index: 2, kind: input, shape index: {}]   ;;  %s5289_s3 = inlined_call_operand.vmem [shape: f32[14,27], index: 3, kind: input, shape index: {}]   ;;  %s5290_s4 = inlined_call_operand.vmem [shape: bf16[5,162,160], index: 4, kind: input, shape index: {}]   ;;  %s5291_s5 = inlined_call_operand.vmem [shape: f32[1,160], index: 5, kind: input, shape index: {}]   ;;  %s5292_s6 = inlined_call_operand.vmem [shape: bf16[5,144,120], index: 6, kind: input, shape index: {}]   ;;  %s5293_s7 = inlined_call_operand.vmem [shape: f32[1,120], index: 7, kind: input, shape index: {}]   ;;  %s5294_s8 = inlined_call_operand.vmem [shape: bf16[120,84], index: 8, kind: input, shape index: {}]   ;;  %s5295_s9 = inlined_call_operand.vmem [shape: f32[1,84], index: 9, kind: input, shape index: {}]   ;;  %s5296_s10 = inlined_call_operand.vmem [shape: bf16[84,10], index: 10, kind: input, shape index: {}]   ;;  %s5297_s11 = inlined_call_operand.vmem [shape: f32[1,10], index: 11, kind: input, shape index: {}]   ;;  %s5298_s12 = inlined_call_operand.hbm [shape: f32[2,1,10], index: 12, kind: output, shape index: {}]  }
   0x1   :  { %19 = vsyncpa [#allocation3 + $0x1], 0  ;;  %s4097_s21 = smov 0   ;;  %s4099_s22 = smov 0  }
   0x2   :  { %s4101_s23 = smov 0   ;;  %s4103_s24 = smov 0  }
   0x3 LB: > { %5303 = sst [smem:[#allocation5_spill]] %s4024_s23  ;;  %s4118_s25 = sadd.s32 4294967295, %s4028_s24   ;;  %s4028_s24 = sphi %s4103_s24, %s5310_s24   ;;  %s4024_s23 = sphi %s4101_s23, %s5312_s23   ;;  %s4020_s22 = sphi %s4099_s22, %s5314_s22   ;;  %s4016_s21 = sphi %s4097_s21, %s5313_s21  }
   0x4   : > { %s2799_s26 = sadd.s32 4294967294, %s4028_s24   ;;  %s4122_s27 = sadd.s32 1, %s4028_s24  }
   0x5   : > { %5304 = sst [smem:[#allocation6_spill]] %s4122_s27  ;;  %s289_s28 = sadd.s32 1, %s4024_s23 }
   0x6   : > { %s286_s29 = ssub.s32 %s4028_s24, %s4122_s27  ;;  %p299_p0 = scmp.ne.s32.totalorder %s4024_s23, %s4020_s22 }
   0x7   : > { %p287_p1 = scmp.eq.s32.totalorder %s286_s29, 0  ;;  %p300_p2 = scmp.eq.s32.totalorder %s4118_s25, 1 }
   0x8   : > { %p305_p3 = scmp.ne.s32.totalorder %s4020_s22, %s4016_s21  ;;  %p306_p4 = scmp.eq.s32.totalorder %s2799_s26, 1 }
   0x9   : > { %s4133_s30 = scalar_select %p287_p1, %s4024_s23, %s289_s28  }
   0xa   : > { %p4135_p5 = por %p300_p2, %p299_p0  ;;  %p4139_p6 = por %p306_p4, %p305_p3 }
   0xb   : > { %5305 = sst [smem:[#allocation7_spill]] %s4133_s30  ;;  %p2802_p7 = scmp.ge.s32.totalorder %s4028_s24, 1 }
   0xc   : > { %s5307_s14 = scalar_select %p4139_p6, 1, 0 }
   0xd   : > { %p365_p8 = scmp.lt.s32.totalorder %s4028_s24, 3 }
   0xe   : > { %5308 = sst [smem:[#allocation8_spill]] %s5307_s14 }
   0xf   : > { %p366_p9 = pnand %p2802_p7, %p365_p8 }
  0x10   : > { %p406_p10 = scmp.lt.s32.totalorder (!%p366_p9), %s4118_s25, 1  ;;  %s4030_s18 = smov (!%p366_p9), 122  }
  0x11   : > { %369 = sbr.rel (%p366_p9) target bundleno = 1332 (0x534), region = 68  ;;  %s4031_s29 = smov (!%p366_p9), 112  }
  0x12   : > { %s2740_s14 = scalar_lea.hbm (!%p366_p9), %s5298_s12, %s4118_s25  ;;  %s3986_s23 = scalar_lea.hbm (!%p366_p9), %s5298_s12, 2 }
  0x13   : > { %s2744_s20 = sshll.u32 (!%p366_p9), %s2740_s14, 4  ;;  %s2745_s20 = int_to_ptr.hbm [resolvable:$true] %s2744_s20 }
  0x16   : > { %v2839_v0 = vld [vmem:[%s5287_s1 + $0x10] sm:$0xf]  ;;  %v3734_v1 = vld [vmem:[%s5287_s1 + $0x14] sm:$0xf0]  ;;  %v2831_v2 = vld [vmem:[%s5287_s1] sm:$0xf] }
  0x17   : > { %v2840_v3 = vor.u32 %v3734_v1, %v2839_v0  ;;  %v3732_v4 = vld [vmem:[%s5287_s1 + $0x4] sm:$0xf0]  ;;  %v2819_v5 = vld [vmem:[%s5287_s1 + $0x30] sm:$0xf]  ;;  %v3738_v6 = vld [vmem:[%s5287_s1 + $0x34] sm:$0xf0] }
  0x18   : > { %v2820_v7 = vor.u32 %v3738_v6, %v2819_v5  ;;  %v3737_v8 = vld [vmem:[%s5287_s1 + $0x34] sm:$0xf]  ;;  %v2821_v9 = vld [vmem:[%s5287_s1 + $0x38] sm:$0xf0]  ;;  %v2832_v10 = vor.u32 %v3732_v4, %v2831_v2  ;;  %v2811_v12 = vld [vmem:[%s5287_s1 + $0x20] sm:$0xf] }
  0x19   : > { %538 = vmatpush.bf16.msra.mxu2 %v2840_v3  ;;  %v2824_v11 = vor.u32 %v3737_v8, %v2821_v9  ;;  %v3736_v13 = vld [vmem:[%s5287_s1 + $0x24] sm:$0xf0]  ;;  %v3735_v14 = vld [vmem:[%s5287_s1 + $0x24] sm:$0xf]  ;;  %s407_s17 = scalar_select %p406_p10, %s4118_s25, 1  ;;  %vm463_vm0 = vcmask 261120  }
  0x1a   : > { %3908 = vmatpush.bf16.msra.mxu3 %v2820_v7  ;;  %476 = vmatpush.bf16.msra.mxu0 %v2820_v7  ;;  %v2812_v15 = vor.u32 %v3736_v13, %v2811_v12  ;;  %v2813_v16 = vld [vmem:[%s5287_s1 + $0x28] sm:$0xf0]  ;;  %v3733_v18 = vld [vmem:[%s5287_s1 + $0x14] sm:$0xf]  ;;  %v2841_v19 = vld [vmem:[%s5287_s1 + $0x18] sm:$0xf0] }
  0x1b   : > { %495 = vmatpush.bf16.msra.mxu1 %v2824_v11  ;;  %v2816_v17 = vor.u32 %v3735_v14, %v2813_v16  ;;  %v2863_v20 = vld [vmem:[%s5287_s1 + $0x50] sm:$0xf]  ;;  %s3730_s16 = sshll.u32 %s407_s17, 5  ;;  %v2844_v21 = vor.u32 %v3733_v18, %v2841_v19  ;;  %v3742_v22 = vld [vmem:[%s5287_s1 + $0x54] sm:$0xf0]  ;;  %vm577_vm2 = vcmask 1046528  }
  0x1c   : > { %v3731_v23 = vld [vmem:[%s5287_s1 + $0x4] sm:$0xf]  ;;  %s410_s30 = scalar_lea.vmem %s5286_s0, %s3730_s16  ;;  %v2864_v24 = vor.u32 %v3742_v22, %v2863_v20  ;;  %v2833_v25 = vld [vmem:[%s5287_s1 + $0x8] sm:$0xf0]  ;;  %v2855_v26 = vld [vmem:[%s5287_s1 + $0x40] sm:$0xf] }
  0x1d   : > { %539 = vmatpush.bf16.msra.mxu2 %v2832_v10  ;;  %v3740_v27 = vld [vmem:[%s5287_s1 + $0x44] sm:$0xf0]  ;;  %v412_v28 = vld [vmem:[%s410_s30] sm:$0xff]  ;;  %v414_v30 = vld [vmem:[%s410_s30 + $0x10] sm:$0xff]  ;;  %v2836_v33 = vor.u32 %v3731_v23, %v2833_v25  ;;  %vm427_vm1 = vsmask.f32 7424 }
  0x1e   : > { %v413_v29 = vld [vmem:[%s410_s30 + $0x8] sm:$0xff]  ;;  %3909 = vmatpush.bf16.msra.mxu3 %v2812_v15  ;;  %477 = vmatpush.bf16.msra.mxu0 %v2812_v15  ;;  %v415_v32 = vld [vmem:[%s410_s30 + $0x18] sm:$0xff]  ;;  %v3741_v34 = vld [vmem:[%s5287_s1 + $0x54] sm:$0xf]  ;;  %v2856_v37 = vor.u32 %v3740_v27, %v2855_v26  ;;  %vm658_vm3 = vsmask.f32 6400 }
  0x1f   : > { %v4210_v31 = vpack.c.bf16 %v413_v29, %v412_v28  ;;  %496 = vmatpush.bf16.msra.mxu1 %v2816_v17  ;;  %v2865_v35 = vld [vmem:[%s5287_s1 + $0x58] sm:$0xf0]  ;;  %v4218_v36 = vpack.c.bf16 %v415_v32, %v414_v30  ;;  %v2887_v39 = vld [vmem:[%s5287_s1 + $0x70] sm:$0xf]  ;;  %v3746_v40 = vld [vmem:[%s5287_s1 + $0x74] sm:$0xf0] }
  0x20   : > { %v2868_v38 = vor.u32 %v3741_v34, %v2865_v35  ;;  %v2879_v41 = vld [vmem:[%s5287_s1 + $0x60] sm:$0xf]  ;;  %v2888_v44 = vor.u32 %v3746_v40, %v2887_v39  ;;  %v3744_v45 = vld [vmem:[%s5287_s1 + $0x64] sm:$0xf0]  ;;  %v3739_v48 = vld [vmem:[%s5287_s1 + $0x44] sm:$0xf] }
  0x21   : > { %2845 = vmatmul.msk.bf16.vlgmr.msra.gmra.mxu2 %vm463_vm0, %v4210_v31  ;;  %v429_v42 = vshrl.u32 %v4210_v31, 16  ;;  %v431_v43 = vshll.u32 %v4210_v31, 16  ;;  %v436_v46 = vshll.u32 %v4218_v36, 16  ;;  %v440_v47 = vshrl.u32 %v4218_v36, 16  ;;  %v2857_v51 = vld [vmem:[%s5287_s1 + $0x48] sm:$0xf0] }
  0x22   : > { %557 = vmatpush.bf16.msrb.mxu3 %v2844_v21  ;;  %613 = vmatpush.bf16.msrb.mxu0 %v2864_v24  ;;  %v2880_v50 = vor.u32 %v3744_v45, %v2879_v41  ;;  %v2860_v54 = vor.u32 %v3739_v48, %v2857_v51  ;;  %v3745_v57 = vld [vmem:[%s5287_s1 + $0x74] sm:$0xf]  ;;  %v2889_v58 = vld [vmem:[%s5287_s1 + $0x78] sm:$0xf0]  ;;  %v2911_v59 = vld [vmem:[%s5287_s1 + $0x90] sm:$0xf] }
  0x23   : > { %632 = vmatpush.bf16.msrb.mxu1 %v2868_v38  ;;  %v433_v49 = vrot.slane %v431_v43, 1  ;;  %698 = vmatpush.bf16.msrb.mxu2 %v2888_v44  ;;  %v438_v52 = vrot.slane %v436_v46, 1  ;;  %v2892_v60 = vor.u32 %v3745_v57, %v2889_v58  ;;  %v3750_v61 = vld [vmem:[%s5287_s1 + $0x94] sm:$0xf0]  ;;  %v578_v63 = vrot.slane %v4210_v31, 1  ;;  %s3980_s30 = sshra.s32 %s2745_s20, 4  ;;  %s3981_s30 = int_to_ptr.hbm [resolvable:$true] %s3980_s30 }
  0x24   : > { %v2912_v62 = vor.u32 %v3750_v61, %v2911_v59  ;;  %v579_v0 = vrot.slane %v4218_v36, 1  ;;  %v3743_v1 = vld [vmem:[%s5287_s1 + $0x64] sm:$0xf]  ;;  %v2881_v2 = vld [vmem:[%s5287_s1 + $0x68] sm:$0xf0]  ;;  %v662_v8 = vrot.slane %v440_v47, 1  ;;  %p3987_p0 = scmp.lt.s32.totalorder %s3981_s30, %s5298_s12 }
  0x25   : > { %v434_v53 = vor.u32 %v433_v49, %v429_v42  ;;  %v442_v55 = vor.u32 %v440_v47, %v438_v52  ;;  %v2903_v3 = vld [vmem:[%s5287_s1 + $0x80] sm:$0xf]  ;;  %v2884_v4 = vor.u32 %v3743_v1, %v2881_v2  ;;  %v3748_v5 = vld [vmem:[%s5287_s1 + $0x84] sm:$0xf0]  ;;  %v659_v9 = vrot.slane %v429_v42, 1  ;;  %s3982_s28 = scalar_lea.hbm %s3981_s30, 1 }
  0x26   : > { %558 = vmatpush.bf16.msrb.mxu3 %v2836_v33  ;;  %614 = vmatpush.bf16.msrb.mxu0 %v2856_v37  ;;  %v2904_v6 = vor.u32 %v3748_v5, %v2903_v3  ;;  %v580_v7 = vsel %vm577_vm2, %v578_v63, %v579_v0  ;;  %v660_v10 = vrot.slane %v431_v43, 2  ;;  %v663_v11 = vrot.slane %v436_v46, 2  ;;  %v3749_v12 = vld [vmem:[%s5287_s1 + $0x94] sm:$0xf]  ;;  %v2913_v13 = vld [vmem:[%s5287_s1 + $0x98] sm:$0xf0]  ;;  %p3983_p11 = scmp.ne.s32.totalorder %s3981_s30, %s3982_s28  ;;  %p3988_p1 = scmp.lt.s32.totalorder %s3986_s23, %s3982_s28 }
  0x27   : > { %v439_v56 = vsel %vm427_vm1, %v434_v53, %v438_v52  ;;  %699 = vmatpush.bf16.msrb.mxu2 %v2880_v50  ;;  %633 = vmatpush.bf16.msrb.mxu1 %v2860_v54  ;;  %v3747_v14 = vld [vmem:[%s5287_s1 + $0x84] sm:$0xf]  ;;  %v2916_v17 = vor.u32 %v3749_v12, %v2913_v13  ;;  %v2905_v18 = vld [vmem:[%s5287_s1 + $0x88] sm:$0xf0]  ;;  %v744_v21 = vrot.slane %v4210_v31, 2  ;;  %v745_v22 = vrot.slane %v4218_v36, 2 }
  0x28   : > { %2826 = vmatmul.msk.bf16.vlgmr.msra.gmra.mxu3 %vm463_vm0, %v442_v55  ;;  %2825 = vmatmul.msk.bf16.vlgmr.msra.gmra.mxu0 %vm463_vm0, %v439_v56  ;;  %v661_v15 = vor.u32 %v660_v10, %v659_v9  ;;  %v664_v16 = vor.u32 %v663_v11, %v662_v8  ;;  %v2908_v19 = vor.u32 %v3747_v14, %v2905_v18  ;;  %vm743_vm4 = vcmask 1045504   ;;  %v819_v54 = vld [vmem:[%s5288_s2] sm:$0x3]  ;;  %p3984_p12 = pnand %p3983_p11, %p4135_p5  ;;  %p3989_p2 = por %p3988_p1, %p3987_p0 }
  0x29   : > { %2827 = vmatmul.msk.bf16.vlgmr.msra.gmra.mxu1 %vm463_vm0, %v439_v56  ;;  %v746_v23 = vsel %vm743_vm4, %v744_v21, %v745_v22  ;;  %vm904_vm5 = vcmask 998400   ;;  %vm934_vm6 = vcmask 1042432   ;;  %vm1156_vm7 = vcmask 1040384  }
  0x2a   : > { %717 = vmatpush.bf16.msra.mxu3 %v2892_v60  ;;  %779 = vmatpush.bf16.msra.mxu0 %v2912_v62  ;;  %v665_v20 = vsel %vm658_vm3, %v661_v15, %v664_v16  ;;  %v821_v60 = vperm.slane %v819_v54, 0  ;;  %vm927_vm8 = vcmask 220160   ;;  %vm1152_vm9 = vcmask 277504   ;;  %p3985_p13 = pneg %p3984_p12 }
  0x2b   : > { %798 = vmatpush.bf16.msra.mxu1 %v2916_v17  ;;  %vm2121_vm10 = vcmask 130048   ;;  %vm2035_vm11 = vcmask 916480   ;;  %vm2644_vm12 = vcmask 1043456   ;;  %vm2712_vm13 = vcmask 1041408  }
  0x2c   : > { %vm2640_vm14 = vcmask 982016   ;;  %vm2708_vm15 = vcmask 687104   ;;  %p3990_p3 = pnand %p3989_p2, %p3985_p13 }
  0x2e   : > { %718 = vmatpush.bf16.msra.mxu3 %v2884_v4  ;;  %780 = vmatpush.bf16.msra.mxu0 %v2904_v6 }
  0x2f   : > { %799 = vmatpush.bf16.msra.mxu1 %v2908_v19 }
  0x31   : > { %2846 = vmatmul.msk.bf16.gmra.mxu2 %vm463_vm0, %v4218_v36 }
  0x38   : > { %2847 = vmatmul.msk.bf16.vlgmr.msrb.gmra.mxu3 %vm463_vm0, %v4210_v31  ;;  %2869 = vmatmul.msk.bf16.vlgmr.msrb.gmra.mxu0 %vm463_vm0, %v580_v7 }
  0x39   : > { %2828 = vmatmul.msk.bf16.gmra.mxu1 %vm463_vm0, %v442_v55 }
  0x41   : > { %2893 = vmatmul.msk.bf16.vlgmr.msrb.gmra.mxu2 %vm463_vm0, %v665_v20 }
  0x48   : > { %2848 = vmatmul.msk.bf16.gmra.mxu3 %vm463_vm0, %v4218_v36  ;;  %2870 = vmatmul.msk.bf16.gmra.mxu0 %vm463_vm0, %v579_v0 }
  0x49   : > { %2871 = vmatmul.msk.bf16.vlgmr.msrb.gmra.mxu1 %vm463_vm0, %v580_v7 }
  0x51   : > { %2894 = vmatmul.msk.bf16.gmra.mxu2 %vm463_vm0, %v664_v16 }
  0x58   : > { %2895 = vmatmul.msk.bf16.vlgmr.msra.gmra.mxu3 %vm463_vm0, %v665_v20  ;;  %2917 = vmatmul.msk.bf16.vlgmr.msra.gmra.mxu0 %vm463_vm0, %v746_v23  ;;  %v822_v20 = vperm.slane %v819_v54, 1 }
  0x59   : > { %2872 = vmatmul.msk.bf16.gmra.mxu1 %vm463_vm0, %v579_v0 }
  0x68   : > { %2896 = vmatmul.msk.bf16.gmra.mxu3 %vm463_vm0, %v664_v16  ;;  %2918 = vmatmul.msk.bf16.gmra.mxu0 %vm463_vm0, %v745_v22 }
  0x69   : > { %2919 = vmatmul.msk.bf16.vlgmr.msra.gmra.mxu1 %vm463_vm0, %v746_v23 }
  0x79   : > { %2920 = vmatmul.msk.bf16.gmra.mxu1 %vm463_vm0, %v745_v22  ;;  %vm2729_vm0 = vcmask 73728  }
  0xa4   : > { %v541_v24 = vpop.f32.mrf.mxu2 }
  0xa5   : > { %v479_v25 = vpop.f32.mrf.mxu0 }
  0xa6   : > { %v498_v26 = vpop.f32.mrf.mxu1  ;;  %v542_v49 = vadd.f32 %v541_v24, %v479_v25 }
  0xab   : > { %v484_v27 = vpop.f32.mrf.mxu3 }
  0xac   : > { %v543_v29 = vpop.f32.mrf.mxu2 }
  0xad   : > { %v481_v28 = vpop.f32.mrf.mxu0 }
  0xae   : > { %v500_v30 = vpop.f32.mrf.mxu1  ;;  %v544_v51 = vadd.f32 %v543_v29, %v481_v28 }
  0xb3   : > { %v486_v31 = vpop.f32.mrf.mxu3 }
  0xb4   : > { %v546_v34 = vpop.f32.mrf.mxu2 }
  0xb5   : > { %v616_v32 = vpop.f32.mrf.mxu0  ;;  %v547_v0 = vadd.f32 %v546_v34, %v484_v27 }
  0xb6   : > { %v4307_v33 = vpop.f32.mrf.mxu1  ;;  %v645_v52 = vadd.f32 %v616_v32, %v542_v49 }
  0xbb   : > { %v560_v35 = vpop.f32.mrf.mxu3 }
  0xbc   : > { %v548_v38 = vpop.f32.mrf.mxu2  ;;  %v561_v4 = vadd.f32 %v560_v35, %v498_v26 }
  0xbd   : > { %v618_v36 = vpop.f32.mrf.mxu0  ;;  %v549_v14 = vadd.f32 %v548_v38, %v486_v31 }
  0xbe   : > { %v4309_v37 = vpop.f32.mrf.mxu1  ;;  %v647_v53 = vadd.f32 %v618_v36, %v544_v51 }
  0xc3   : > { %v562_v39 = vpop.f32.mrf.mxu3 }
  0xc4   : > { %v701_v42 = vpop.f32.mrf.mxu2  ;;  %v563_v17 = vadd.f32 %v562_v39, %v500_v30 }
  0xc5   : > { %v621_v40 = vpop.f32.mrf.mxu0  ;;  %v730_v55 = vadd.f32 %v701_v42, %v645_v52 }
  0xc6   : > { %v635_v41 = vpop.f32.mrf.mxu1  ;;  %v649_v2 = vadd.f32 %v621_v40, %v547_v0 }
  0xc7   : > { %v646_v7 = vadd.f32 %v635_v41, %v561_v4 }
  0xcb   : > { %v4311_v43 = vpop.f32.mrf.mxu3 }
  0xcc   : > { %v703_v47 = vpop.f32.mrf.mxu2 }
  0xcd   : > { %v623_v44 = vpop.f32.mrf.mxu0  ;;  %v732_v56 = vadd.f32 %v703_v47, %v647_v53 }
  0xce   : > { %v637_v45 = vpop.f32.mrf.mxu1  ;;  %v651_v21 = vadd.f32 %v623_v44, %v549_v14  ;;  %v3786_v14 = vld [vmem:[%s5290_s4 + $0x11c] sm:$0xf0] }
  0xcf   : > { %v648_v24 = vadd.f32 %v637_v45, %v563_v17  ;;  %v3784_v17 = vld [vmem:[%s5290_s4 + $0x10c] sm:$0xf0] }
  0xd3   : > { %v4313_v46 = vpop.f32.mrf.mxu3 }
  0xd4   : > { %v706_v63 = vpop.f32.mrf.mxu2 }
  0xd5   : > { %v782_v48 = vpop.f32.mrf.mxu0  ;;  %v734_v5 = vadd.f32 %v706_v63, %v649_v2 }
  0xd6   : > { %v4315_v50 = vpop.f32.mrf.mxu1  ;;  %v811_v59 = vadd.f32 %v782_v48, %v730_v55  ;;  %v566_v48 = vadd.f32 %v4311_v43, %v4307_v33 }
  0xd8   : > { %v825_v3 = vadd.f32 %v821_v60, %v811_v59  ;;  %v650_v53 = vadd.f32 %v4315_v50, %v566_v48  ;;  %v568_v59 = vadd.f32 %v4313_v46, %v4309_v37 }
  0xda   : > { %v833_v9 = vmax.f32 %v825_v3, 0.0 }
  0xdb   : > { %v720_v57 = vpop.f32.mrf.mxu3 }
  0xdc   : > { %v731_v13 = vadd.f32 %v720_v57, %v646_v7  ;;  %v708_v18 = vpop.f32.mrf.mxu2  ;;  %v850_v22 = vrot.slane %v833_v9, 1 }
  0xdd   : > { %v784_v58 = vpop.f32.mrf.mxu0  ;;  %v736_v25 = vadd.f32 %v708_v18, %v651_v21 }
  0xde   : > { %v4320_v61 = vpop.f32.mrf.mxu1  ;;  %v813_v62 = vadd.f32 %v784_v58, %v732_v56 }
  0xdf   : > { %v652_v50 = vadd.f32 %v4320_v61, %v568_v59 }
  0xe0   : > { %v827_v1 = vadd.f32 %v821_v60, %v813_v62 }
  0xe2   : > { %v835_v6 = vmax.f32 %v827_v1, 0.0 }
  0xe3   : > { %v722_v10 = vpop.f32.mrf.mxu3 }
  0xe4   : > { %v851_v15 = vrot.slane %v835_v6, 1  ;;  %v733_v28 = vadd.f32 %v722_v10, %v648_v24 }
  0xe5   : > { %v787_v8 = vpop.f32.mrf.mxu0 }
  0xe6   : > { %v815_v11 = vadd.f32 %v787_v8, %v734_v5  ;;  %v801_v12 = vpop.f32.mrf.mxu1  ;;  %v852_v27 = vsel %vm577_vm2, %v850_v22, %v851_v15  ;;  %v3785_v22 = vld [vmem:[%s5290_s4 + $0x11c] sm:$0xf] }
  0xe7   : > { %v812_v19 = vadd.f32 %v801_v12, %v731_v13  ;;  %v4324_v30 = vmax.f32 %v833_v9, %v852_v27  ;;  %v3006_v13 = vld [vmem:[%s5290_s4 + $0x118] sm:$0xf] }
  0xe8   : > { %v829_v16 = vadd.f32 %v821_v60, %v815_v11 }
  0xe9   : > { %v826_v29 = vadd.f32 %v822_v20, %v812_v19  ;;  %v2990_v19 = vld [vmem:[%s5290_s4 + $0xf8] sm:$0xf] }
  0xea   : > { %v837_v23 = vmax.f32 %v829_v16, 0.0  ;;  %v3007_v16 = vor.u32 %v3786_v14, %v3006_v13 }
  0xeb   : > { %v725_v39 = vpop.f32.mrf.mxu3  ;;  %v834_v41 = vmax.f32 %v826_v29, 0.0  ;;  %v3783_v29 = vld [vmem:[%s5290_s4 + $0x10c] sm:$0xf] }
  0xec   : > { %v856_v26 = vrot.slane %v837_v23, 1  ;;  %v735_v58 = vadd.f32 %v725_v39, %v650_v53  ;;  %1163 = vmatpush.bf16.msrb.mxu0 %v3007_v16  ;;  %v2950_v16 = vld [vmem:[%s5290_s4 + $0xa8] sm:$0xf] }
  0xed   : > { %v789_v32 = vpop.f32.mrf.mxu0  ;;  %v853_v51 = vrot.slane %v834_v41, 1 }
  0xee   : > { %v817_v34 = vadd.f32 %v789_v32, %v736_v25  ;;  %v803_v35 = vpop.f32.mrf.mxu1  ;;  %v857_v31 = vsel %vm577_vm2, %v851_v15, %v856_v26  ;;  %v2998_v15 = vld [vmem:[%s5290_s4 + $0x108] sm:$0xf] }
  0xef   : > { %v814_v36 = vadd.f32 %v803_v35, %v733_v28  ;;  %v4326_v38 = vmax.f32 %v835_v6, %v857_v31  ;;  %v2999_v18 = vor.u32 %v3784_v17, %v2998_v15  ;;  %v2982_v32 = vld [vmem:[%s5290_s4 + $0xe8] sm:$0xf]  ;;  %v3000_v35 = vld [vmem:[%s5290_s4 + $0x110] sm:$0xf0]  ;;  %v3772_v17 = vld [vmem:[%s5290_s4 + $0xac] sm:$0xf0] }
  0xf0   : > { %v831_v40 = vadd.f32 %v821_v60, %v817_v34  ;;  %v3780_v34 = vld [vmem:[%s5290_s4 + $0xec] sm:$0xf0]  ;;  %v3003_v31 = vor.u32 %v3783_v29, %v3000_v35  ;;  %v3014_v15 = vld [vmem:[%s5290_s4 + $0x128] sm:$0xf]  ;;  %v3762_v35 = vld [vmem:[%s5290_s4 + $0x54] sm:$0xf0] }
  0xf1   : > { %v828_v42 = vadd.f32 %v822_v20, %v814_v36  ;;  %v3961_v44 = vpack.i.bf16 %v4324_v30, %v4326_v38  ;;  %1164 = vmatpush.bf16.msrb.mxu0 %v2999_v18  ;;  %v3781_v36 = vld [vmem:[%s5290_s4 + $0xfc] sm:$0xf]  ;;  %v3788_v18 = vld [vmem:[%s5290_s4 + $0x12c] sm:$0xf0]  ;;  %v3764_v29 = vld [vmem:[%s5290_s4 + $0x64] sm:$0xf0] }
  0xf2   : > { %v839_v45 = vmax.f32 %v831_v40, 0.0 }
  0xf3   : > { %v836_v47 = vmax.f32 %v828_v42, 0.0  ;;  %3962 = vrot.lane.b32.xlu2 %v3961_v44, %s4030_s18  ;;  %v727_v60 = vpop.f32.mrf.mxu3  ;;  %v2947_v42 = vld [vmem:[%s5290_s4 + $0x148] sm:$0x11]  ;;  %v2983_v44 = vor.u32 %v3780_v34, %v2982_v32  ;;  %v3072_v34 = vld [vmem:[%s5290_s4 + $0x50] sm:$0xf] }
  0xf4   : > { %v860_v49 = vrot.slane %v839_v45, 1  ;;  %v737_v63 = vadd.f32 %v727_v60, %v652_v50  ;;  %v1109_v59 = vunpack.c.h.b16 %v2947_v42 }
  0xf5   : > { %v854_v52 = vrot.slane %v836_v47, 1 }
  0xf6   : > { %v806_v54 = vpop.f32.mrf.mxu1  ;;  %v878_v55 = vmax.f32 %v839_v45, %v860_v49  ;;  %v861_v57 = vsel %vm577_vm2, %v856_v26, %v860_v49  ;;  %v2974_v45 = vld [vmem:[%s5290_s4 + $0xd8] sm:$0xf] }
  0xf7   : > { %v855_v56 = vsel %vm577_vm2, %v853_v51, %v854_v52  ;;  %v816_v62 = vadd.f32 %v806_v54, %v735_v58  ;;  %v4341_v43 = vmax.f32 %v837_v23, %v861_v57  ;;  %v3008_v23 = vld [vmem:[%s5290_s4 + $0x120] sm:$0xf0]  ;;  %v3779_v54 = vld [vmem:[%s5290_s4 + $0xec] sm:$0xf]  ;;  %v1108_v58 = vunpack.c.l.b16 %v2947_v42 }
  0xf8   : > { %900 = vrot.lane.b32.xlu1 %v878_v55, %s4030_s18  ;;  %v4339_v33 = vmax.f32 %v834_v41, %v855_v56  ;;  %v3011_v26 = vor.u32 %v3785_v22, %v3008_v23  ;;  %v2992_v41 = vld [vmem:[%s5290_s4 + $0x100] sm:$0xf0]  ;;  %v3766_v22 = vld [vmem:[%s5290_s4 + $0x74] sm:$0xf0]  ;;  %v926_v23 = vld [vmem:[%s5289_s3 + $0x8] sm:$0x3f] }
  0xf9   : > { %v830_v0 = vadd.f32 %v822_v20, %v816_v62  ;;  %v2995_v48 = vor.u32 %v3781_v36, %v2992_v41  ;;  %v3064_v36 = vld [vmem:[%s5290_s4 + $0x40] sm:$0xf]  ;;  %v3763_v41 = vld [vmem:[%s5290_s4 + $0x64] sm:$0xf]  ;;  %v3082_v42 = vld [vmem:[%s5290_s4 + $0x68] sm:$0xf0] }
  0xfa   : > { %v3956_v2 = vpack.i.bf16 %v4341_v43, %v4339_v33  ;;  %1191 = vmatpush.bf16.msrb.mxu1 %v3011_v26 }
  0xfb   : > { %v838_v5 = vmax.f32 %v830_v0, 0.0 }
  0xfd   : > { %v858_v6 = vrot.slane %v838_v5, 1 }
  0xfe   : > { %v808_v1 = vpop.f32.mrf.mxu1  ;;  %1192 = vmatpush.bf16.msrb.mxu1 %v3003_v31  ;;  %v3073_v31 = vor.u32 %v3762_v35, %v3072_v34  ;;  %v3753_v34 = vld [vmem:[%s5290_s4 + $0x14] sm:$0xf]  ;;  %v3042_v35 = vld [vmem:[%s5290_s4 + $0x18] sm:$0xf0] }
  0xff   : > { %v818_v3 = vadd.f32 %v808_v1, %v737_v63  ;;  %v859_v61 = vsel %vm577_vm2, %v854_v52, %v858_v6 }
 0x100   : > { %3957 = vrot.lane.b32.xlu1 %v3956_v2, %s4030_s18  ;;  %v4350_v10 = vmax.f32 %v836_v47, %v859_v61  ;;  %v3778_v47 = vld [vmem:[%s5290_s4 + $0xdc] sm:$0xf0] }
 0x101   : > { %v832_v4 = vadd.f32 %v822_v20, %v818_v3  ;;  %v3782_v20 = vld [vmem:[%s5290_s4 + $0xfc] sm:$0xf0]  ;;  %v2975_v62 = vor.u32 %v3778_v47, %v2974_v45  ;;  %v2966_v3 = vld [vmem:[%s5290_s4 + $0xc8] sm:$0xf]  ;;  %v3777_v45 = vld [vmem:[%s5290_s4 + $0xdc] sm:$0xf] }
 0x102   : > { %v2991_v28 = vor.u32 %v3782_v20, %v2990_v19  ;;  %1193 = vmatpush.bf16.msrb.mxu1 %v2995_v48  ;;  %v3765_v19 = vld [vmem:[%s5290_s4 + $0x74] sm:$0xf]  ;;  %v3090_v20 = vld [vmem:[%s5290_s4 + $0x78] sm:$0xf0]  ;;  %v2976_v47 = vld [vmem:[%s5290_s4 + $0xe0] sm:$0xf0] }
 0x103   : > { %v840_v37 = vmax.f32 %v832_v4, 0.0  ;;  %v3776_v4 = vld [vmem:[%s5290_s4 + $0xcc] sm:$0xf0]  ;;  %v3093_v26 = vor.u32 %v3765_v19, %v3090_v20  ;;  %v3789_v48 = vld [vmem:[%s5290_s4 + $0x13c] sm:$0xf] }
 0x104   : > { %1165 = vmatpush.bf16.msrb.mxu0 %v2991_v28  ;;  %v2967_v61 = vor.u32 %v3776_v4, %v2966_v3  ;;  %v3080_v28 = vld [vmem:[%s5290_s4 + $0x60] sm:$0xf]  ;;  %v3756_v3 = vld [vmem:[%s5290_s4 + $0x24] sm:$0xf0] }
 0x105   : > { %v862_v46 = vrot.slane %v840_v37, 1  ;;  %v3081_v32 = vor.u32 %v3764_v29, %v3080_v28  ;;  %v3032_v19 = vld [vmem:[%s5290_s4] sm:$0xf]  ;;  %v3752_v20 = vld [vmem:[%s5290_s4 + $0x4] sm:$0xf0] }
 0x107   : > { %v879_v7 = vmax.f32 %v840_v37, %v862_v46  ;;  %v863_v8 = vsel %vm577_vm2, %v858_v6, %v862_v46  ;;  %v1130_v46 = vpack.c.b16 %v1108_v58, %v1108_v58  ;;  %v1131_v6 = vpack.c.b16 %v1109_v59, %v1109_v59  ;;  %v3775_v58 = vld [vmem:[%s5290_s4 + $0xcc] sm:$0xf] }
 0x108   : > { %v877_v9 = vmax.f32 %v838_v5, %v863_v8  ;;  %1166 = vmatpush.bf16.msrb.mxu0 %v2983_v44  ;;  %v925_v8 = vld [vmem:[%s5289_s3] sm:$0xff]  ;;  %v3085_v44 = vor.u32 %v3763_v41, %v3082_v42  ;;  %v3034_v42 = vld [vmem:[%s5290_s4 + $0x8] sm:$0xf0] }
 0x109   : > { %902 = vrot.lane.b32.xlu0 %v879_v7, %s4030_s18  ;;  %v3751_v41 = vld [vmem:[%s5290_s4 + $0x4] sm:$0xf] }
 0x10a   : > { %v3951_v11 = vpack.i.bf16 %v4350_v10, %v877_v9 }
 0x10c   : > { %1167 = vmatpush.bf16.msrb.mxu0 %v2975_v62  ;;  %v3787_v62 = vld [vmem:[%s5290_s4 + $0x12c] sm:$0xf] }
 0x110   : > { %1168 = vmatpush.bf16.msrb.mxu0 %v2967_v61 }
 0x111   : > { %3952 = vrot.lane.b32.xlu0 %v3951_v11, %s4030_s18  ;;  %v3022_v11 = vld [vmem:[%s5290_s4 + $0x138] sm:$0xf] }
 0x14d   : > { %v3963_v39 = vpop.permute.xlu2 %3962 }
 0x14e   : > { %v3964_v49 = vunpack.i.l.bf16 %v3963_v39  ;;  %v3965_v60 = vunpack.i.h.bf16 %v3963_v39  ;;  %v3760_v39 = vld [vmem:[%s5290_s4 + $0x44] sm:$0xf0] }
 0x16a   : > { %v901_v12 = vpop.permute.xlu1 %900 }
 0x172   : > { %v3958_v40 = vpop.permute.xlu1 %3957 }
 0x173   : > { %v3960_v51 = vunpack.i.h.bf16 %v3958_v40  ;;  %v3959_v52 = vunpack.i.l.bf16 %v3958_v40  ;;  %v3065_v40 = vor.u32 %v3760_v39, %v3064_v36  ;;  %v3045_v36 = vor.u32 %v3753_v34, %v3042_v35  ;;  %v3106_v39 = vld [vmem:[%s5290_s4 + $0x98] sm:$0xf0] }
 0x174   : > { %v3169_v34 = vld [vmem:[%s5290_s4 + $0x198] sm:$0xf0] }
 0x175   : > { %v905_v37 = vsel %vm904_vm5, %v3965_v60, %v3959_v52  ;;  %v2968_v60 = vld [vmem:[%s5290_s4 + $0xd0] sm:$0xf0] }
 0x17b   : > { %v903_v21 = vpop.permute.xlu0 %902 }
 0x17c   : > { %v908_v24 = vsel %vm904_vm5, %v901_v12, %v903_v21  ;;  %v924_v25 = vmax.f32 %v879_v7, %v903_v21  ;;  %v3790_v12 = vld [vmem:[%s5290_s4 + $0x13c] sm:$0xf0]  ;;  %v3088_v21 = vld [vmem:[%s5290_s4 + $0x70] sm:$0xf] }
 0x17d   : > { %v923_v27 = vmax.f32 %v878_v55, %v908_v24  ;;  %v2984_v55 = vld [vmem:[%s5290_s4 + $0xf0] sm:$0xf0]  ;;  %v3023_v14 = vor.u32 %v3790_v12, %v3022_v11  ;;  %v2951_v24 = vor.u32 %v3772_v17, %v2950_v16  ;;  %v3104_v11 = vld [vmem:[%s5290_s4 + $0x90] sm:$0xf]  ;;  %v3770_v12 = vld [vmem:[%s5290_s4 + $0x94] sm:$0xf0] }
 0x17e   : > { %2924 = vmatpush.msk.msrb.mxu3 %vm934_vm6, %v924_v25  ;;  %v2987_v1 = vor.u32 %v3779_v54, %v2984_v55  ;;  %v3015_v25 = vor.u32 %v3788_v18, %v3014_v15  ;;  %v3771_v15 = vld [vmem:[%s5290_s4 + $0xac] sm:$0xf]  ;;  %v2952_v16 = vld [vmem:[%s5290_s4 + $0xb0] sm:$0xf0] }
 0x17f   : > { %2921 = vmatpush.msk.msra.mxu2 %vm934_vm6, %v923_v27  ;;  %v3089_v27 = vor.u32 %v3766_v22, %v3088_v21  ;;  %v2955_v18 = vor.u32 %v3771_v15, %v2952_v16  ;;  %v3096_v21 = vld [vmem:[%s5290_s4 + $0x80] sm:$0xf] }
 0x180   : > { %1194 = vmatpush.bf16.msrb.mxu1 %v2987_v1  ;;  %v1009_v1 = vld [vmem:[%s5290_s4 + $0xa0] sm:$0x11] }
 0x181   : > { %v1280_v4 = vunpack.c.l.b16 %v1009_v1  ;;  %v1281_v22 = vunpack.c.h.b16 %v1009_v1  ;;  %v3175_v16 = vld [vmem:[%s5290_s4 + $0x1a0] sm:$0xf] }
 0x183   : > { %v3953_v53 = vpop.permute.xlu0 %3952  ;;  %v1303_v28 = vpack.c.b16 %v1281_v22, %v1281_v22  ;;  %v3199_v22 = vld [vmem:[%s5290_s4 + $0x1d0] sm:$0xf] }
 0x184   : > { %v3955_v56 = vunpack.i.h.bf16 %v3953_v53  ;;  %v3954_v57 = vunpack.i.l.bf16 %v3953_v53  ;;  %v3758_v53 = vld [vmem:[%s5290_s4 + $0x34] sm:$0xf0] }
 0x186   : > { %v922_v50 = vmax.f32 %v877_v9, %v3954_v57  ;;  %v907_v63 = vsel %vm904_vm5, %v3960_v51, %v3954_v57  ;;  %v906_v0 = vsel %vm904_vm5, %v3964_v49, %v3955_v56  ;;  %v920_v5 = vmax.f32 %v4350_v10, %v3955_v56  ;;  %v2958_v10 = vld [vmem:[%s5290_s4 + $0xb8] sm:$0xf]  ;;  %v3024_v51 = vld [vmem:[%s5290_s4 + $0x140] sm:$0xf0]  ;;  %v3761_v56 = vld [vmem:[%s5290_s4 + $0x54] sm:$0xf] }
 0x187   : > { %v921_v2 = vmax.f32 %v4341_v43, %v907_v63  ;;  %v919_v7 = vmax.f32 %v4326_v38, %v906_v0  ;;  %v918_v43 = vmax.f32 %v4339_v33, %v3959_v52  ;;  %v917_v9 = vmax.f32 %v4324_v30, %v905_v37  ;;  %v3774_v38 = vld [vmem:[%s5290_s4 + $0xbc] sm:$0xf0]  ;;  %v3056_v52 = vld [vmem:[%s5290_s4 + $0x30] sm:$0xf]  ;;  %v3074_v57 = vld [vmem:[%s5290_s4 + $0x58] sm:$0xf0] }
 0x188   : > { %977 = vmatpush.msrb.mxu3 %v922_v50  ;;  %v1158_v33 = vsel %vm1156_vm7, %v1130_v46, 0  ;;  %v1161_v30 = vsel %vm1156_vm7, %v1131_v6, 0  ;;  %v2959_v13 = vor.u32 %v3774_v38, %v2958_v10  ;;  %v2979_v49 = vor.u32 %v3777_v45, %v2976_v47  ;;  %v3016_v50 = vld [vmem:[%s5290_s4 + $0x130] sm:$0xf0]  ;;  %v3759_v37 = vld [vmem:[%s5290_s4 + $0x44] sm:$0xf] }
 0x189   : > { %954 = vmatpush.msra.mxu2 %v921_v2  ;;  %v3027_v54 = vor.u32 %v3789_v48, %v3024_v51  ;;  %v3057_v55 = vor.u32 %v3758_v53, %v3056_v52  ;;  %v3077_v59 = vor.u32 %v3761_v56, %v3074_v57  ;;  %v2971_v63 = vor.u32 %v3775_v58, %v2968_v60  ;;  %v3048_v2 = vld [vmem:[%s5290_s4 + $0x20] sm:$0xf]  ;;  %v3066_v46 = vld [vmem:[%s5290_s4 + $0x48] sm:$0xf0]  ;;  %v3040_v10 = vld [vmem:[%s5290_s4 + $0x10] sm:$0xf] }
 0x18a   : > { %978 = vmatpush.msrb.mxu3 %v920_v5  ;;  %1169 = vmatpush.bf16.msrb.mxu0 %v2959_v13  ;;  %v3019_v0 = vor.u32 %v3787_v62, %v3016_v50  ;;  %v3049_v5 = vor.u32 %v3756_v3, %v3048_v2  ;;  %v1302_v6 = vpack.c.b16 %v1280_v4, %v1280_v4  ;;  %v3754_v38 = vld [vmem:[%s5290_s4 + $0x14] sm:$0xf0]  ;;  %v3098_v47 = vld [vmem:[%s5290_s4 + $0x88] sm:$0xf0]  ;;  %v3132_v52 = vld [vmem:[%s5290_s4 + $0x1f0] sm:$0x11] }
 0x18b   : > { %955 = vmatpush.msra.mxu2 %v919_v7  ;;  %1195 = vmatpush.bf16.msrb.mxu1 %v2979_v49  ;;  %v3069_v7 = vor.u32 %v3759_v37, %v3066_v46  ;;  %v3105_v13 = vor.u32 %v3770_v12, %v3104_v11  ;;  %v3037_v45 = vor.u32 %v3751_v41, %v3034_v42  ;;  %v3806_v60 = vld [vmem:[%s5290_s4 + $0x1c4] sm:$0xf0]  ;;  %v3805_v50 = vld [vmem:[%s5290_s4 + $0x1c4] sm:$0xf]  ;;  %v3207_v11 = vld [vmem:[%s5290_s4 + $0x1e0] sm:$0xf] }
 0x18c   : > { %979 = vmatpush.msrb.mxu3 %v918_v43  ;;  %v3773_v43 = vld [vmem:[%s5290_s4 + $0xbc] sm:$0xf]  ;;  %v1327_v61 = vsel %vm1156_vm7, %v1302_v6, 0  ;;  %v3810_v12 = vld [vmem:[%s5290_s4 + $0x1e4] sm:$0xf0] }
 0x18d   : > { %956 = vmatpush.msra.mxu2 %v917_v9  ;;  %2925 = vmatmul.msk.f32.vlgmr.msrb.gmra.mxu3 %vm927_vm8, %v925_v8  ;;  %v3798_v41 = vld [vmem:[%s5290_s4 + $0x184] sm:$0xf0]  ;;  %v3797_v42 = vld [vmem:[%s5290_s4 + $0x184] sm:$0xf] }
 0x18e   : > { %2922 = vmatmul.msk.f32.vlgmr.msra.gmra.mxu2 %vm927_vm8, %v925_v8  ;;  %1210 = vmatpush.bf16.msra.mxu3 %v1161_v30  ;;  %v2960_v8 = vld [vmem:[%s5290_s4 + $0xc0] sm:$0xf0]  ;;  %v3757_v30 = vld [vmem:[%s5290_s4 + $0x34] sm:$0xf] }
 0x18f   : > { %1182 = vmatpush.bf16.msrb.mxu2 %v1158_v33  ;;  %1170 = vmatpush.bf16.msrb.mxu0 %v2951_v24  ;;  %v2963_v9 = vor.u32 %v3773_v43, %v2960_v8  ;;  %v3041_v33 = vor.u32 %v3754_v38, %v3040_v10  ;;  %v3768_v24 = vld [vmem:[%s5290_s4 + $0x84] sm:$0xf0]  ;;  %v3804_v8 = vld [vmem:[%s5290_s4 + $0x1b4] sm:$0xf0] }
 0x190   : > { %1196 = vmatpush.bf16.msrb.mxu1 %v2971_v63  ;;  %v3193_v63 = vld [vmem:[%s5290_s4 + $0x1c8] sm:$0xf0] }
 0x191   : > { %v3196_v46 = vor.u32 %v3805_v50, %v3193_v63  ;;  %v3286_v50 = vld [vmem:[%s5290_s4 + $0x258] sm:$0xf]  ;;  %v3824_v63 = vld [vmem:[%s5290_s4 + $0x25c] sm:$0xf0] }
 0x192   : > { %1211 = vmatpush.bf16.msra.mxu3 %v3027_v54  ;;  %v1476_v54 = vunpack.c.l.b16 %v3132_v52 }
 0x193   : > { %1183 = vmatpush.bf16.msrb.mxu2 %v3023_v14  ;;  %1360 = vmatpush.bf16.msra.mxu0 %v3093_v26  ;;  %v3058_v14 = vld [vmem:[%s5290_s4 + $0x38] sm:$0xf0]  ;;  %v3755_v26 = vld [vmem:[%s5290_s4 + $0x24] sm:$0xf] }
 0x194   : > { %1197 = vmatpush.bf16.msrb.mxu1 %v2963_v9  ;;  %v3061_v17 = vor.u32 %v3757_v30, %v3058_v14  ;;  %v1498_v2 = vpack.c.b16 %v1476_v54, %v1476_v54  ;;  %v3185_v9 = vld [vmem:[%s5290_s4 + $0x1b8] sm:$0xf0]  ;;  %v3809_v30 = vld [vmem:[%s5290_s4 + $0x1e4] sm:$0xf]  ;;  %v3796_v54 = vld [vmem:[%s5290_s4 + $0x174] sm:$0xf0] }
 0x195   : > { %2926 = vmatmul.msk.f32.gmra.mxu3 %vm927_vm8, %v926_v23 }
 0x196   : > { %2923 = vmatmul.msk.f32.gmra.mxu2 %vm927_vm8, %v926_v23  ;;  %1212 = vmatpush.bf16.msra.mxu3 %v3019_v0  ;;  %v3033_v23 = vor.u32 %v3752_v20, %v3032_v19  ;;  %v1524_v38 = vsel %vm1156_vm7, %v1498_v2, 0  ;;  %v3177_v19 = vld [vmem:[%s5290_s4 + $0x1a8] sm:$0xf0]  ;;  %v3208_v20 = vor.u32 %v3810_v12, %v3207_v11  ;;  %v3823_v2 = vld [vmem:[%s5290_s4 + $0x25c] sm:$0xf] }
 0x197   : > { %1184 = vmatpush.bf16.msrb.mxu2 %v3015_v25  ;;  %1361 = vmatpush.bf16.msra.mxu0 %v3085_v44  ;;  %v3097_v25 = vor.u32 %v3768_v24, %v3096_v21  ;;  %v3767_v44 = vld [vmem:[%s5290_s4 + $0x84] sm:$0xf]  ;;  %v3807_v24 = vld [vmem:[%s5290_s4 + $0x1d4] sm:$0xf]  ;;  %v3821_v12 = vld [vmem:[%s5290_s4 + $0x24c] sm:$0xf] }
 0x198   : > { %1198 = vmatpush.bf16.msrb.mxu1 %v2955_v18  ;;  %v3101_v48 = vor.u32 %v3767_v44, %v3098_v47  ;;  %v3801_v18 = vld [vmem:[%s5290_s4 + $0x1a4] sm:$0xf]  ;;  %v3161_v44 = vld [vmem:[%s5290_s4 + $0x188] sm:$0xf0]  ;;  %v3826_v47 = vld [vmem:[%s5290_s4 + $0x26c] sm:$0xf0] }
 0x19a   : > { %1351 = vmatpush.bf16.msrb.mxu3 %v1327_v61  ;;  %v3803_v61 = vld [vmem:[%s5290_s4 + $0x1b4] sm:$0xf] }
 0x19b   : > { %1332 = vmatpush.bf16.msra.mxu2 %v3089_v27  ;;  %1362 = vmatpush.bf16.msra.mxu0 %v3077_v59  ;;  %v3050_v27 = vld [vmem:[%s5290_s4 + $0x28] sm:$0xf0]  ;;  %v3191_v59 = vld [vmem:[%s5290_s4 + $0x1c0] sm:$0xf]  ;;  %v3188_v15 = vor.u32 %v3803_v61, %v3185_v9  ;;  %v3287_v61 = vor.u32 %v3824_v63, %v3286_v50  ;;  %v3815_v63 = vld [vmem:[%s5290_s4 + $0x21c] sm:$0xf] }
 0x19c   : > { %v3053_v29 = vor.u32 %v3755_v26, %v3050_v27  ;;  %v3192_v37 = vor.u32 %v3806_v60, %v3191_v59  ;;  %v3180_v27 = vor.u32 %v3801_v18, %v3177_v19  ;;  %v3791_v18 = vld [vmem:[%s5290_s4 + $0x154] sm:$0xf]  ;;  %v3137_v19 = vld [vmem:[%s5290_s4 + $0x158] sm:$0xf0]  ;;  %v3816_v50 = vld [vmem:[%s5290_s4 + $0x21c] sm:$0xf0] }
 0x19e   : > { %1352 = vmatpush.bf16.msrb.mxu3 %v3105_v13  ;;  %v3209_v13 = vld [vmem:[%s5290_s4 + $0x1e8] sm:$0xf0] }
 0x19f   : > { %1333 = vmatpush.bf16.msra.mxu2 %v3081_v32  ;;  %1363 = vmatpush.bf16.msra.mxu0 %v3069_v7  ;;  %v1330_v32 = vsel %vm1156_vm7, %v1303_v28, 0  ;;  %v3183_v7 = vld [vmem:[%s5290_s4 + $0x1b0] sm:$0xf]  ;;  %v3212_v21 = vor.u32 %v3809_v30, %v3209_v13  ;;  %v3280_v30 = vld [vmem:[%s5290_s4 + $0x250] sm:$0xf0] }
 0x1a0   : > { %1379 = vmatpush.bf16.msra.mxu1 %v1330_v32  ;;  %v3184_v14 = vor.u32 %v3804_v8, %v3183_v7  ;;  %v3167_v28 = vld [vmem:[%s5290_s4 + $0x190] sm:$0xf]  ;;  %v3799_v32 = vld [vmem:[%s5290_s4 + $0x194] sm:$0xf]  ;;  %v3794_v7 = vld [vmem:[%s5290_s4 + $0x164] sm:$0xf0] }
 0x1a1   : > { %v3145_v8 = vld [vmem:[%s5290_s4 + $0x168] sm:$0xf0] }
 0x1a2   : > { %1353 = vmatpush.bf16.msrb.mxu3 %v3097_v25  ;;  %v3201_v25 = vld [vmem:[%s5290_s4 + $0x1d8] sm:$0xf0] }
 0x1a3   : > { %1334 = vmatpush.bf16.msra.mxu2 %v3073_v31  ;;  %1364 = vmatpush.bf16.msra.mxu0 %v3061_v17  ;;  %v3769_v31 = vld [vmem:[%s5290_s4 + $0x94] sm:$0xf]  ;;  %v3802_v17 = vld [vmem:[%s5290_s4 + $0x1a4] sm:$0xf0] }
 0x1a4   : > { %v3176_v26 = vor.u32 %v3802_v17, %v3175_v16  ;;  %v3792_v17 = vld [vmem:[%s5290_s4 + $0x154] sm:$0xf0] }
 0x1a7   : > { %1335 = vmatpush.bf16.msra.mxu2 %v3065_v40  ;;  %1365 = vmatpush.bf16.msra.mxu0 %v3053_v29  ;;  %v3109_v40 = vor.u32 %v3769_v31, %v3106_v39  ;;  %v3800_v29 = vld [vmem:[%s5290_s4 + $0x194] sm:$0xf0]  ;;  %v3204_v31 = vor.u32 %v3807_v24, %v3201_v25  ;;  %v3172_v39 = vor.u32 %v3799_v32, %v3169_v34  ;;  %v3820_v24 = vld [vmem:[%s5290_s4 + $0x23c] sm:$0xf0]  ;;  %v3819_v25 = vld [vmem:[%s5290_s4 + $0x23c] sm:$0xf] }
 0x1a9   : > { %1380 = vmatpush.bf16.msra.mxu1 %v3109_v40  ;;  %v3159_v40 = vld [vmem:[%s5290_s4 + $0x180] sm:$0xf] }
 0x1ab   : > { %1336 = vmatpush.bf16.msra.mxu2 %v3057_v55  ;;  %1366 = vmatpush.bf16.msra.mxu0 %v3045_v36  ;;  %v1477_v55 = vunpack.c.h.b16 %v3132_v52  ;;  %v3168_v36 = vor.u32 %v3800_v29, %v3167_v28  ;;  %v3164_v52 = vor.u32 %v3797_v42, %v3161_v44  ;;  %v3140_v28 = vor.u32 %v3791_v18, %v3137_v19  ;;  %v3818_v42 = vld [vmem:[%s5290_s4 + $0x22c] sm:$0xf0]  ;;  %v3817_v44 = vld [vmem:[%s5290_s4 + $0x22c] sm:$0xf]  ;;  %v3238_v18 = vld [vmem:[%s5290_s4 + $0x1f8] sm:$0xf] }
 0x1ac   : > { %v3812_v19 = vld [vmem:[%s5290_s4 + $0x1fc] sm:$0xf0] }
 0x1ad   : > { %1381 = vmatpush.bf16.msra.mxu1 %v3101_v48  ;;  %v1499_v3 = vpack.c.b16 %v1477_v55, %v1477_v55  ;;  %v3825_v48 = vld [vmem:[%s5290_s4 + $0x26c] sm:$0xf]  ;;  %v3795_v55 = vld [vmem:[%s5290_s4 + $0x174] sm:$0xf] }
 0x1af   : > { %1337 = vmatpush.bf16.msra.mxu2 %v3049_v5  ;;  %1367 = vmatpush.bf16.msra.mxu0 %v3037_v45  ;;  %v3294_v45 = vld [vmem:[%s5290_s4 + $0x268] sm:$0xf] }
 0x1b0   : > { %v3295_v59 = vor.u32 %v3826_v47, %v3294_v45  ;;  %v3264_v45 = vld [vmem:[%s5290_s4 + $0x230] sm:$0xf0] }
 0x1b3   : > { %1338 = vmatpush.bf16.msra.mxu2 %v3041_v33  ;;  %v1527_v33 = vsel %vm1156_vm7, %v1499_v3, 0  ;;  %v3288_v3 = vld [vmem:[%s5290_s4 + $0x260] sm:$0xf0] }
 0x1b4   : > { %v3291_v9 = vor.u32 %v3823_v2, %v3288_v3  ;;  %v3256_v2 = vld [vmem:[%s5290_s4 + $0x220] sm:$0xf0]  ;;  %v3397_v3 = vld [vmem:[%s5290_s4 + $0x310] sm:$0xf] }
 0x1b7   : > { %1339 = vmatpush.bf16.msra.mxu2 %v3033_v23  ;;  %v3808_v23 = vld [vmem:[%s5290_s4 + $0x1d4] sm:$0xf0] }
 0x1b8   : > { %v3200_v35 = vor.u32 %v3808_v23, %v3199_v22  ;;  %v3270_v23 = vld [vmem:[%s5290_s4 + $0x238] sm:$0xf] }
 0x1b9   : > { %v3271_v34 = vor.u32 %v3820_v24, %v3270_v23  ;;  %v3811_v24 = vld [vmem:[%s5290_s4 + $0x1fc] sm:$0xf] }
 0x210   : > { %v981_v49 = vpop.f32.mrf.mxu3 }
 0x211   : > { %v958_v51 = vpop.f32.mrf.mxu2 }
 0x218   : > { %v984_v53 = vpop.f32.mrf.mxu3 }
 0x219   : > { %v4626_v56 = vpack.c.bf16 %v984_v53, %v981_v49  ;;  %v961_v57 = vpop.f32.mrf.mxu2  ;;  %v3296_v49 = vld [vmem:[%s5290_s4 + $0x270] sm:$0xf0]  ;;  %v3151_v53 = vld [vmem:[%s5290_s4 + $0x170] sm:$0xf] }
 0x21a   : > { %v4628_v58 = vpack.c.bf16 %v961_v57, %v958_v51  ;;  %v3160_v51 = vor.u32 %v3798_v41, %v3159_v40  ;;  %v3153_v57 = vld [vmem:[%s5290_s4 + $0x178] sm:$0xf0]  ;;  %v3299_v60 = vor.u32 %v3825_v48, %v3296_v49  ;;  %v3312_v40 = vld [vmem:[%s5290_s4 + $0x290] sm:$0xf0]  ;;  %v3262_v41 = vld [vmem:[%s5290_s4 + $0x228] sm:$0xf] }
 0x21b   : > { %v1042_v62 = vshll.u32 %v4626_v56, 16  ;;  %v1040_v4 = vshrl.u32 %v4626_v56, 16  ;;  %v1413_v48 = vrot.slane %v4626_v56, 1 }
 0x21c   : > { %v1033_v0 = vshrl.u32 %v4628_v58, 16  ;;  %v1035_v1 = vshll.u32 %v4628_v58, 16  ;;  %v1412_v47 = vrot.slane %v4628_v58, 1 }
 0x21d   : > { %v1044_v5 = vrot.slane %v1042_v62, 1 }
 0x21e   : > { %v1037_v6 = vrot.slane %v1035_v1, 1 }
 0x21f   : > { %v1045_v43 = vor.u32 %v1044_v5, %v1040_v4  ;;  %v3235_v5 = vld [vmem:[%s5290_s4 + $0x298] sm:$0x11] }
 0x220   : > { %v1038_v10 = vor.u32 %v1037_v6, %v1033_v0  ;;  %v3143_v6 = vld [vmem:[%s5290_s4 + $0x160] sm:$0xf]  ;;  %v1680_v11 = vunpack.c.h.b16 %v3235_v5 }
 0x221   : > { %3028 = vmatmul.msk.bf16.vlgmr.msrb.gmra.mxu2 %vm1152_vm9, %v1045_v43  ;;  %3029 = vmatmul.msk.bf16.vlgmr.msra.gmra.mxu3 %vm1152_vm9, %v1045_v43  ;;  %v3793_v43 = vld [vmem:[%s5290_s4 + $0x164] sm:$0xf]  ;;  %v3144_v13 = vor.u32 %v3794_v7, %v3143_v6 }
 0x222   : > { %1529 = vmatpush.bf16.msra.mxu3 %v3192_v37  ;;  %1557 = vmatpush.bf16.msrb.mxu2 %v3196_v46  ;;  %v3152_v37 = vor.u32 %v3796_v54, %v3151_v53  ;;  %v3156_v46 = vor.u32 %v3795_v55, %v3153_v57  ;;  %v1702_v22 = vpack.c.b16 %v1680_v11, %v1680_v11  ;;  %v3828_v53 = vld [vmem:[%s5290_s4 + $0x27c] sm:$0xf0]  ;;  %v3827_v54 = vld [vmem:[%s5290_s4 + $0x27c] sm:$0xf]  ;;  %v3248_v11 = vld [vmem:[%s5290_s4 + $0x210] sm:$0xf0] }
 0x223   : > { %1171 = vmatmul.bf16.vlgmr.msrb.gmra.mxu0 %v1038_v10  ;;  %1199 = vmatmul.bf16.vlgmr.msrb.gmra.mxu1 %v1038_v10  ;;  %v3278_v10 = vld [vmem:[%s5290_s4 + $0x248] sm:$0xf]  ;;  %v3263_v55 = vor.u32 %v3818_v42, %v3262_v41  ;;  %v3267_v57 = vor.u32 %v3817_v44, %v3264_v45  ;;  %v1611_v42 = vrot.slane %v1033_v0, 1  ;;  %v1612_v44 = vrot.slane %v1035_v1, 2  ;;  %v3839_v45 = vld [vmem:[%s5290_s4 + $0x2e4] sm:$0xf] }
 0x224   : > { %1548 = vmatpush.bf16.msrb.mxu1 %v1524_v38  ;;  %1576 = vmatpush.bf16.msrb.mxu0 %v1527_v33  ;;  %v3822_v38 = vld [vmem:[%s5290_s4 + $0x24c] sm:$0xf0]  ;;  %v1679_v33 = vunpack.c.l.b16 %v3235_v5  ;;  %v1730_v32 = vsel %vm1156_vm7, %v1702_v22, 0  ;;  %v3846_v5 = vld [vmem:[%s5290_s4 + $0x314] sm:$0xf0] }
 0x225   : > { %v3279_v16 = vor.u32 %v3822_v38, %v3278_v10  ;;  %v3813_v10 = vld [vmem:[%s5290_s4 + $0x20c] sm:$0xf]  ;;  %v3398_v38 = vor.u32 %v3846_v5, %v3397_v3  ;;  %v3365_v1 = vld [vmem:[%s5290_s4 + $0x2d0] sm:$0xf] }
 0x226   : > { %1530 = vmatpush.bf16.msra.mxu3 %v3184_v14  ;;  %1558 = vmatpush.bf16.msrb.mxu2 %v3188_v15  ;;  %v3148_v14 = vor.u32 %v3793_v43, %v3145_v8  ;;  %v3135_v15 = vld [vmem:[%s5290_s4 + $0x150] sm:$0xf]  ;;  %v3259_v8 = vor.u32 %v3815_v63, %v3256_v2  ;;  %v3367_v63 = vld [vmem:[%s5290_s4 + $0x2d8] sm:$0xf0]  ;;  %v3357_v2 = vld [vmem:[%s5290_s4 + $0x2c0] sm:$0xf] }
 0x228   : > { %1549 = vmatpush.bf16.msrb.mxu1 %v3208_v20  ;;  %1577 = vmatpush.bf16.msrb.mxu0 %v3212_v21  ;;  %v3283_v20 = vor.u32 %v3821_v12, %v3280_v30  ;;  %v1701_v21 = vpack.c.b16 %v1679_v33, %v1679_v33  ;;  %v3389_v12 = vld [vmem:[%s5290_s4 + $0x300] sm:$0xf] }
 0x229   : > { %v3338_v30 = vld [vmem:[%s5290_s4 + $0x340] sm:$0x11] }
 0x22a   : > { %1531 = vmatpush.bf16.msra.mxu3 %v3176_v26  ;;  %1559 = vmatpush.bf16.msrb.mxu2 %v3180_v27  ;;  %v3272_v26 = vld [vmem:[%s5290_s4 + $0x240] sm:$0xf0]  ;;  %v3136_v27 = vor.u32 %v3792_v17, %v3135_v15  ;;  %v1727_v29 = vsel %vm1156_vm7, %v1701_v21, 0  ;;  %v3391_v15 = vld [vmem:[%s5290_s4 + $0x308] sm:$0xf0]  ;;  %v3251_v17 = vor.u32 %v3813_v10, %v3248_v11  ;;  %v1879_v21 = vunpack.c.h.b16 %v3338_v30 }
 0x22b   : > { %v3359_v10 = vld [vmem:[%s5290_s4 + $0x2c8] sm:$0xf0] }
 0x22c   : > { %1550 = vmatpush.bf16.msrb.mxu1 %v3200_v35  ;;  %1578 = vmatpush.bf16.msrb.mxu0 %v3204_v31  ;;  %v3275_v35 = vor.u32 %v3819_v25, %v3272_v26  ;;  %v3310_v31 = vld [vmem:[%s5290_s4 + $0x288] sm:$0xf]  ;;  %v3240_v25 = vld [vmem:[%s5290_s4 + $0x200] sm:$0xf0]  ;;  %v3381_v26 = vld [vmem:[%s5290_s4 + $0x2f0] sm:$0xf] }
 0x22e   : > { %1532 = vmatpush.bf16.msra.mxu3 %v3168_v36  ;;  %1560 = vmatpush.bf16.msrb.mxu2 %v3172_v39  ;;  %v3830_v36 = vld [vmem:[%s5290_s4 + $0x28c] sm:$0xf0]  ;;  %v3829_v39 = vld [vmem:[%s5290_s4 + $0x28c] sm:$0xf] }
 0x22f   : > { %v3311_v49 = vor.u32 %v3830_v36, %v3310_v31  ;;  %v1615_v31 = vrot.slane %v1042_v62, 2  ;;  %v3840_v62 = vld [vmem:[%s5290_s4 + $0x2e4] sm:$0xf0] }
 0x231   : > { %1340 = vmatmul.bf16.vlgmr.msra.gmra.mxu2 %v4628_v58  ;;  %3110 = vmatmul.msk.bf16.vlgmr.msrb.gmra.mxu3 %vm1152_vm9, %v4626_v56 }
 0x232   : > { %1533 = vmatpush.bf16.msra.mxu3 %v3160_v51  ;;  %1561 = vmatpush.bf16.msrb.mxu2 %v3164_v52  ;;  %v3315_v51 = vor.u32 %v3829_v39, %v3312_v40  ;;  %v3302_v52 = vld [vmem:[%s5290_s4 + $0x278] sm:$0xf]  ;;  %v1901_v39 = vpack.c.b16 %v1879_v21, %v1879_v21  ;;  %v3343_v21 = vld [vmem:[%s5290_s4 + $0x2a8] sm:$0xf0] }
 0x233   : > { %1368 = vmatmul.bf16.vlgmr.msra.gmra.mxu0 %v4628_v58  ;;  %3111 = vmatmul.msk.bf16.vlgmr.msra.gmra.mxu1 %vm1152_vm9, %v4626_v56  ;;  %v3303_v6 = vor.u32 %v3828_v53, %v3302_v52  ;;  %v1613_v52 = vor.u32 %v1612_v44, %v1611_v42 }
 0x234   : > { %1732 = vmatpush.bf16.msra.mxu1 %v3295_v59  ;;  %1760 = vmatpush.bf16.msra.mxu0 %v3299_v60  ;;  %v3304_v59 = vld [vmem:[%s5290_s4 + $0x280] sm:$0xf0]  ;;  %v3254_v60 = vld [vmem:[%s5290_s4 + $0x218] sm:$0xf] }
 0x235   : > { %v3307_v7 = vor.u32 %v3827_v54, %v3304_v59  ;;  %v3255_v43 = vor.u32 %v3816_v50, %v3254_v60  ;;  %v3415_v59 = vld [vmem:[%s5290_s4 + $0x338] sm:$0xf0]  ;;  %v3838_v60 = vld [vmem:[%s5290_s4 + $0x2d4] sm:$0xf0]  ;;  %v3837_v50 = vld [vmem:[%s5290_s4 + $0x2d4] sm:$0xf] }
 0x236   : > { %1534 = vmatpush.bf16.msra.mxu3 %v3152_v37  ;;  %1562 = vmatpush.bf16.msrb.mxu2 %v3156_v46  ;;  %v3845_v37 = vld [vmem:[%s5290_s4 + $0x314] sm:$0xf]  ;;  %v3399_v46 = vld [vmem:[%s5290_s4 + $0x318] sm:$0xf0] }
 0x237   : > { %v3402_v33 = vor.u32 %v3845_v37, %v3399_v46  ;;  %v3405_v37 = vld [vmem:[%s5290_s4 + $0x320] sm:$0xf]  ;;  %v3366_v46 = vor.u32 %v3838_v60, %v3365_v1 }
 0x238   : > { %1733 = vmatpush.bf16.msra.mxu1 %v3287_v61  ;;  %1761 = vmatpush.bf16.msra.mxu0 %v3291_v9  ;;  %v3246_v61 = vld [vmem:[%s5290_s4 + $0x208] sm:$0xf]  ;;  %v3814_v9 = vld [vmem:[%s5290_s4 + $0x20c] sm:$0xf0] }
 0x23a   : > { %1535 = vmatpush.bf16.msra.mxu3 %v3144_v13  ;;  %1563 = vmatpush.bf16.msrb.mxu2 %v3148_v14  ;;  %v3844_v13 = vld [vmem:[%s5290_s4 + $0x304] sm:$0xf0]  ;;  %v3843_v14 = vld [vmem:[%s5290_s4 + $0x304] sm:$0xf] }
 0x23b   : > { %v3390_v22 = vor.u32 %v3844_v13, %v3389_v12  ;;  %v3394_v23 = vor.u32 %v3843_v14, %v3391_v15  ;;  %v3834_v13 = vld [vmem:[%s5290_s4 + $0x2b4] sm:$0xf0]  ;;  %v3833_v14 = vld [vmem:[%s5290_s4 + $0x2b4] sm:$0xf]  ;;  %v3351_v15 = vld [vmem:[%s5290_s4 + $0x2b8] sm:$0xf0] }
 0x23c   : > { %1734 = vmatpush.bf16.msra.mxu1 %v3279_v16  ;;  %1762 = vmatpush.bf16.msra.mxu0 %v3283_v20  ;;  %v3247_v16 = vor.u32 %v3814_v9, %v3246_v61  ;;  %v1878_v20 = vunpack.c.l.b16 %v3338_v30  ;;  %v3836_v61 = vld [vmem:[%s5290_s4 + $0x2c4] sm:$0xf0]  ;;  %v3835_v9 = vld [vmem:[%s5290_s4 + $0x2c4] sm:$0xf]  ;;  %v3349_v30 = vld [vmem:[%s5290_s4 + $0x2b0] sm:$0xf] }
 0x23d   : > { %v3358_v11 = vor.u32 %v3836_v61, %v3357_v2  ;;  %v3362_v12 = vor.u32 %v3835_v9, %v3359_v10  ;;  %v3859_v61 = vld [vmem:[%s5292_s6 + $0x40] sm:$0xff]  ;;  %v3868_v9 = vld [vmem:[%s5292_s6 + $0x88] sm:$0xff] }
 0x23e   : > { %1536 = vmatpush.bf16.msra.mxu3 %v3136_v27  ;;  %1564 = vmatpush.bf16.msrb.mxu2 %v3140_v28  ;;  %v3842_v27 = vld [vmem:[%s5290_s4 + $0x2f4] sm:$0xf0]  ;;  %v3841_v28 = vld [vmem:[%s5290_s4 + $0x2f4] sm:$0xf]  ;;  %v1900_v36 = vpack.c.b16 %v1878_v20, %v1878_v20  ;;  %v3831_v20 = vld [vmem:[%s5290_s4 + $0x2a4] sm:$0xf] }
 0x23f   : > { %v3382_v40 = vor.u32 %v3842_v27, %v3381_v26 }
 0x240   : > { %1735 = vmatpush.bf16.msra.mxu1 %v3271_v34  ;;  %1763 = vmatpush.bf16.msra.mxu0 %v3275_v35  ;;  %v1614_v34 = vrot.slane %v1040_v4, 1  ;;  %v3243_v35 = vor.u32 %v3811_v24, %v3240_v25  ;;  %v3373_v4 = vld [vmem:[%s5290_s4 + $0x2e0] sm:$0xf]  ;;  %v3346_v24 = vor.u32 %v3831_v20, %v3343_v21  ;;  %v1814_v25 = vrot.slane %v4628_v58, 2 }
 0x241   : > { %1537 = vmatmul.bf16.vlgmr.msra.gmra.mxu3 %v1412_v47  ;;  %1565 = vmatmul.bf16.vlgmr.msrb.gmra.mxu2 %v1412_v47  ;;  %v3375_v47 = vld [vmem:[%s5290_s4 + $0x2e8] sm:$0xf0]  ;;  %v3374_v53 = vor.u32 %v3840_v62, %v3373_v4  ;;  %v1991_v21 = vld [vmem:[%s5291_s5] sm:$0x3] }
 0x242   : > { %1751 = vmatpush.bf16.msrb.mxu3 %v1727_v29  ;;  %1779 = vmatpush.bf16.msra.mxu2 %v1730_v32  ;;  %v3383_v29 = vld [vmem:[%s5290_s4 + $0x2f8] sm:$0xf0]  ;;  %v3239_v32 = vor.u32 %v3812_v19, %v3238_v18  ;;  %v1616_v0 = vor.u32 %v1615_v31, %v1614_v34  ;;  %v3378_v54 = vor.u32 %v3839_v45, %v3375_v47  ;;  %v3341_v18 = vld [vmem:[%s5290_s4 + $0x2a0] sm:$0xf]  ;;  %v3832_v19 = vld [vmem:[%s5290_s4 + $0x2a4] sm:$0xf0] }
 0x243   : > { %3213 = vmatmul.msk.bf16.vlgmr.msrb.gmra.mxu1 %vm1152_vm9, %v1413_v48  ;;  %3214 = vmatmul.msk.bf16.vlgmr.msrb.gmra.mxu0 %vm1152_vm9, %v1413_v48  ;;  %v3386_v41 = vor.u32 %v3841_v28, %v3383_v29  ;;  %v1926_v48 = vsel %vm1156_vm7, %v1900_v36, 0 }
 0x244   : > { %1736 = vmatpush.bf16.msra.mxu1 %v3263_v55  ;;  %1764 = vmatpush.bf16.msra.mxu0 %v3267_v57  ;;  %v3850_v55 = vld [vmem:[%s5290_s4 + $0x334] sm:$0xf0]  ;;  %v3849_v57 = vld [vmem:[%s5290_s4 + $0x334] sm:$0xf] }
 0x245   : > { %v3418_v5 = vor.u32 %v3849_v57, %v3415_v59 }
 0x246   : > { %1752 = vmatpush.bf16.msrb.mxu3 %v3311_v49  ;;  %1780 = vmatpush.bf16.msra.mxu2 %v3315_v51  ;;  %v1929_v49 = vsel %vm1156_vm7, %v1901_v39, 0  ;;  %v3413_v51 = vld [vmem:[%s5290_s4 + $0x330] sm:$0xf] }
 0x247   : > { %v3414_v3 = vor.u32 %v3850_v55, %v3413_v51 }
 0x248   : > { %1737 = vmatpush.bf16.msra.mxu1 %v3255_v43  ;;  %1765 = vmatpush.bf16.msra.mxu0 %v3259_v8  ;;  %v3847_v43 = vld [vmem:[%s5290_s4 + $0x324] sm:$0xf]  ;;  %v3407_v8 = vld [vmem:[%s5290_s4 + $0x328] sm:$0xf0] }
 0x24a   : > { %1753 = vmatpush.bf16.msrb.mxu3 %v3303_v6  ;;  %1781 = vmatpush.bf16.msra.mxu2 %v3307_v7  ;;  %v3370_v6 = vor.u32 %v3837_v50, %v3367_v63  ;;  %v3848_v7 = vld [vmem:[%s5290_s4 + $0x324] sm:$0xf0] }
 0x24c   : > { %1738 = vmatpush.bf16.msra.mxu1 %v3247_v16  ;;  %1766 = vmatpush.bf16.msra.mxu0 %v3251_v17  ;;  %v3350_v16 = vor.u32 %v3834_v13, %v3349_v30  ;;  %v3354_v17 = vor.u32 %v3833_v14, %v3351_v15 }
 0x24e   : > { %1931 = vmatpush.bf16.msra.mxu3 %v3398_v38  ;;  %1959 = vmatpush.bf16.msrb.mxu2 %v3402_v33  ;;  %v3406_v38 = vor.u32 %v3848_v7, %v3405_v37  ;;  %v3410_v33 = vor.u32 %v3847_v43, %v3407_v8  ;;  %v3858_v8 = vld [vmem:[%s5292_s6 + $0x38] sm:$0xff] }
 0x250   : > { %1739 = vmatpush.bf16.msra.mxu1 %v3239_v32  ;;  %1767 = vmatpush.bf16.msra.mxu0 %v3243_v35 }
 0x251   : > { %3316 = vmatmul.msk.bf16.vlgmr.msrb.gmra.mxu3 %vm1152_vm9, %v1616_v0  ;;  %3317 = vmatmul.msk.bf16.vlgmr.msra.gmra.mxu2 %vm1152_vm9, %v1616_v0 }
 0x252   : > { %1932 = vmatpush.bf16.msra.mxu3 %v3390_v22  ;;  %1960 = vmatpush.bf16.msrb.mxu2 %v3394_v23  ;;  %v1815_v22 = vrot.slane %v4626_v56, 2  ;;  %v3342_v23 = vor.u32 %v3832_v19, %v3341_v18 }
 0x253   : > { %1740 = vmatmul.bf16.vlgmr.msra.gmra.mxu1 %v1613_v52  ;;  %1768 = vmatmul.bf16.vlgmr.msra.gmra.mxu0 %v1613_v52 }
 0x254   : > { %1950 = vmatpush.bf16.msrb.mxu1 %v1926_v48  ;;  %1978 = vmatpush.bf16.msrb.mxu0 %v1929_v49 }
 0x256   : > { %1933 = vmatpush.bf16.msra.mxu3 %v3382_v40  ;;  %1961 = vmatpush.bf16.msrb.mxu2 %v3386_v41 }
 0x258   : > { %1951 = vmatpush.bf16.msrb.mxu1 %v3414_v3  ;;  %1979 = vmatpush.bf16.msrb.mxu0 %v3418_v5 }
 0x25a   : > { %1934 = vmatpush.bf16.msra.mxu3 %v3374_v53  ;;  %1962 = vmatpush.bf16.msrb.mxu2 %v3378_v54 }
 0x25c   : > { %1952 = vmatpush.bf16.msrb.mxu1 %v3406_v38  ;;  %1980 = vmatpush.bf16.msrb.mxu0 %v3410_v33 }
 0x25e   : > { %1935 = vmatpush.bf16.msra.mxu3 %v3366_v46  ;;  %1963 = vmatpush.bf16.msrb.mxu2 %v3370_v6 }
 0x260   : > { %2125 = vmatpush.bf16.msra.mxu1 %v3858_v8  ;;  %v3884_v8 = vld [vmem:[%s5292_s6 + $0x108] sm:$0xff] }
 0x262   : > { %1936 = vmatpush.bf16.msra.mxu3 %v3358_v11  ;;  %1964 = vmatpush.bf16.msrb.mxu2 %v3362_v12 }
 0x263   : > { %3419 = vmatmul.msk.bf16.vlgmr.msrb.gmra.mxu1 %vm1152_vm9, %v1815_v22  ;;  %3420 = vmatmul.msk.bf16.vlgmr.msrb.gmra.mxu0 %vm1152_vm9, %v1815_v22 }
 0x266   : > { %1937 = vmatpush.bf16.msra.mxu3 %v3350_v16  ;;  %1965 = vmatpush.bf16.msrb.mxu2 %v3354_v17 }
 0x26a   : > { %1938 = vmatpush.bf16.msra.mxu3 %v3342_v23  ;;  %1966 = vmatpush.bf16.msrb.mxu2 %v3346_v24 }
 0x26d   : > { %1939 = vmatmul.bf16.vlgmr.msra.gmra.mxu3 %v1814_v25  ;;  %1967 = vmatmul.bf16.vlgmr.msrb.gmra.mxu2 %v1814_v25 }
 0x26e   : > { %2145 = vmatpush.bf16.msrb.mxu3 %v3859_v61  ;;  %2253 = vmatpush.bf16.msra.mxu2 %v3868_v9  ;;  %v3856_v61 = vld [vmem:[%s5292_s6 + $0x28] sm:$0xff]  ;;  %v3865_v9 = vld [vmem:[%s5292_s6 + $0x70] sm:$0xff] }
 0x2a0   : > { %v1172_v26 = vpop.f32.mrf.mxu0  ;;  %v1200_v27 = vpop.f32.mrf.mxu1 }
 0x2a4   : > { %v1186_v28 = vpop.f32.mrf.mxu2  ;;  %v1214_v29 = vpop.f32.mrf.mxu3 }
 0x2a5   : > { %v1187_v32 = vadd.f32 %v1186_v28, %v1172_v26  ;;  %v1215_v34 = vadd.f32 %v1214_v29, %v1200_v27  ;;  %v1993_v29 = vperm.slane %v1991_v21, 0 }
 0x2a8   : > { %v1174_v35 = vpop.f32.mrf.mxu0  ;;  %v1202_v56 = vpop.f32.mrf.mxu1 }
 0x2ac   : > { %v1188_v31 = vpop.f32.mrf.mxu2  ;;  %v1216_v36 = vpop.f32.mrf.mxu3 }
 0x2ad   : > { %v1189_v7 = vadd.f32 %v1188_v31, %v1174_v35  ;;  %v1217_v43 = vadd.f32 %v1216_v36, %v1202_v56 }
 0x2b0   : > { %v1369_v39 = vpop.f32.mrf.mxu0  ;;  %v1383_v40 = vpop.f32.mrf.mxu1 }
 0x2b1   : > { %v1370_v2 = vadd.f32 %v1369_v39, %v1215_v34  ;;  %v1994_v34 = vperm.slane %v1991_v21, 1  ;;  %v3852_v21 = vld [vmem:[%s5292_s6 + $0x8] sm:$0xff] }
 0x2b3   : > { %v1384_v10 = vadd.f32 %v1383_v40, %v1370_v2 }
 0x2b4   : > { %v1341_v41 = vpop.f32.mrf.mxu2  ;;  %v1355_v42 = vpop.f32.mrf.mxu3 }
 0x2b5   : > { %v1342_v3 = vadd.f32 %v1341_v41, %v1187_v32 }
 0x2b7   : > { %v1356_v38 = vadd.f32 %v1355_v42, %v1342_v3 }
 0x2b8   : > { %v1371_v44 = vpop.f32.mrf.mxu0  ;;  %v1385_v4 = vpop.f32.mrf.mxu1 }
 0x2b9   : > { %v1372_v12 = vadd.f32 %v1371_v44, %v1217_v43  ;;  %v3875_v43 = vld [vmem:[%s5292_s6 + $0xc0] sm:$0xff] }
 0x2bb   : > { %v1386_v24 = vadd.f32 %v1385_v4, %v1372_v12  ;;  %v3873_v12 = vld [vmem:[%s5292_s6 + $0xb0] sm:$0xff] }
 0x2bc   : > { %v1343_v62 = vpop.f32.mrf.mxu2  ;;  %v1357_v58 = vpop.f32.mrf.mxu3 }
 0x2bd   : > { %v1344_v30 = vadd.f32 %v1343_v62, %v1189_v7  ;;  %v3866_v7 = vld [vmem:[%s5292_s6 + $0x78] sm:$0xff] }
 0x2bf   : > { %v1358_v25 = vadd.f32 %v1357_v58, %v1344_v30  ;;  %v3882_v30 = vld [vmem:[%s5292_s6 + $0xf8] sm:$0xff] }
 0x2c0   : > { %v1552_v45 = vpop.f32.mrf.mxu1  ;;  %v1580_v47 = vpop.f32.mrf.mxu0 }
 0x2c4   : > { %v1538_v0 = vpop.f32.mrf.mxu3  ;;  %v1566_v1 = vpop.f32.mrf.mxu2 }
 0x2c5   : > { %v1553_v5 = vadd.f32 %v1552_v45, %v1538_v0  ;;  %v1581_v37 = vadd.f32 %v1580_v47, %v1566_v1 }
 0x2c7   : > { %v1585_v15 = vadd.f32 %v1553_v5, %v1356_v38  ;;  %v1586_v16 = vadd.f32 %v1581_v37, %v1384_v10  ;;  %v3867_v5 = vld [vmem:[%s5292_s6 + $0x80] sm:$0xff]  ;;  %v3876_v37 = vld [vmem:[%s5292_s6 + $0xc8] sm:$0xff]  ;;  %v3874_v10 = vld [vmem:[%s5292_s6 + $0xb8] sm:$0xff] }
 0x2c8   : > { %v1554_v48 = vpop.f32.mrf.mxu1  ;;  %v1582_v49 = vpop.f32.mrf.mxu0  ;;  %2233 = vmatpush.bf16.msra.mxu0 %v3867_v5  ;;  %2339 = vmatpush.bf16.msra.mxu3 %v3876_v37  ;;  %v3883_v38 = vld [vmem:[%s5292_s6 + $0x100] sm:$0xff] }
 0x2cc   : > { %v1540_v51 = vpop.f32.mrf.mxu3  ;;  %v1568_v52 = vpop.f32.mrf.mxu2  ;;  %2234 = vmatpush.bf16.msra.mxu0 %v3866_v7  ;;  %2340 = vmatpush.bf16.msra.mxu3 %v3875_v43  ;;  %v3902_v7 = vld [vmem:[%s5294_s8 + $0x30] sm:$0xff] }
 0x2cd   : > { %v1555_v19 = vadd.f32 %v1554_v48, %v1540_v51  ;;  %v1583_v20 = vadd.f32 %v1582_v49, %v1568_v52 }
 0x2cf   : > { %v1587_v35 = vadd.f32 %v1555_v19, %v1358_v25  ;;  %v1588_v56 = vadd.f32 %v1583_v20, %v1386_v24  ;;  %v3871_v19 = vld [vmem:[%s5292_s6 + $0xa0] sm:$0xff]  ;;  %v3880_v20 = vld [vmem:[%s5292_s6 + $0xe8] sm:$0xff] }
 0x2d0   : > { %v1741_v53 = vpop.f32.mrf.mxu1  ;;  %v1769_v54 = vpop.f32.mrf.mxu0  ;;  %2235 = vmatpush.bf16.msra.mxu0 %v3865_v9  ;;  %2341 = vmatpush.bf16.msra.mxu3 %v3874_v10  ;;  %v3879_v24 = vld [vmem:[%s5292_s6 + $0xe0] sm:$0xff]  ;;  %v3899_v10 = vld [vmem:[%s5294_s8 + $0x18] sm:$0xff] }
 0x2d1   : > { %v3851_v25 = vld [vmem:[%s5292_s6] sm:$0xff] }
 0x2d4   : > { %v1755_v55 = vpop.f32.mrf.mxu3  ;;  %v1783_v57 = vpop.f32.mrf.mxu2  ;;  %2342 = vmatpush.bf16.msra.mxu3 %v3873_v12  ;;  %v3897_v12 = vld [vmem:[%s5294_s8 + $0x8] sm:$0xff] }
 0x2d5   : > { %v1756_v33 = vadd.f32 %v1755_v55, %v1741_v53  ;;  %v1784_v11 = vadd.f32 %v1783_v57, %v1769_v54 }
 0x2d7   : > { %v1788_v22 = vadd.f32 %v1756_v33, %v1585_v15  ;;  %v1789_v23 = vadd.f32 %v1784_v11, %v1586_v16  ;;  %v3855_v33 = vld [vmem:[%s5292_s6 + $0x20] sm:$0xff]  ;;  %v3864_v11 = vld [vmem:[%s5292_s6 + $0x68] sm:$0xff]  ;;  %v3881_v16 = vld [vmem:[%s5292_s6 + $0xf0] sm:$0xff] }
 0x2d8   : > { %v1743_v59 = vpop.f32.mrf.mxu1  ;;  %v1771_v60 = vpop.f32.mrf.mxu0  ;;  %2236 = vmatpush.bf16.msra.mxu0 %v3864_v11  ;;  %v3872_v15 = vld [vmem:[%s5292_s6 + $0xa8] sm:$0xff] }
 0x2d9   : > { %2343 = vmatpush.bf16.msra.mxu3 %v3872_v15 }
 0x2dc   : > { %v1757_v50 = vpop.f32.mrf.mxu3  ;;  %v1785_v63 = vpop.f32.mrf.mxu2 }
 0x2dd   : > { %v1758_v26 = vadd.f32 %v1757_v50, %v1743_v59  ;;  %v1786_v27 = vadd.f32 %v1785_v63, %v1771_v60  ;;  %2344 = vmatpush.bf16.msra.mxu3 %v3871_v19 }
 0x2df   : > { %v1790_v39 = vadd.f32 %v1758_v26, %v1587_v35  ;;  %v1791_v40 = vadd.f32 %v1786_v27, %v1588_v56  ;;  %v3860_v26 = vld [vmem:[%s5292_s6 + $0x48] sm:$0xff]  ;;  %v3869_v27 = vld [vmem:[%s5292_s6 + $0x90] sm:$0xff] }
 0x2e0   : > { %v1954_v46 = vpop.f32.mrf.mxu1  ;;  %v1982_v6 = vpop.f32.mrf.mxu0 }
 0x2e8   : > { %v1956_v31 = vpop.f32.mrf.mxu1  ;;  %v1984_v36 = vpop.f32.mrf.mxu0 }
 0x2f0   : > { %v1940_v13 = vpop.f32.mrf.mxu3  ;;  %v1968_v14 = vpop.f32.mrf.mxu2 }
 0x2f1   : > { %v1955_v17 = vadd.f32 %v1954_v46, %v1940_v13  ;;  %v1983_v18 = vadd.f32 %v1982_v6, %v1968_v14  ;;  %v3885_v46 = vld [vmem:[%s5292_s6 + $0x110] sm:$0xff]  ;;  %v3854_v13 = vld [vmem:[%s5292_s6 + $0x18] sm:$0xff]  ;;  %v3863_v14 = vld [vmem:[%s5292_s6 + $0x60] sm:$0xff] }
 0x2f2   : > { %v3857_v6 = vld [vmem:[%s5292_s6 + $0x30] sm:$0xff]  ;;  %2445 = vmatpush.bf16.msrb.mxu2 %v3885_v46  ;;  %2237 = vmatpush.bf16.msra.mxu0 %v3863_v14 }
 0x2f3   : > { %v1987_v28 = vadd.f32 %v1955_v17, %v1788_v22  ;;  %v1988_v32 = vadd.f32 %v1983_v18, %v1789_v23  ;;  %2126 = vmatpush.bf16.msra.mxu1 %v3857_v6  ;;  %v3853_v17 = vld [vmem:[%s5292_s6 + $0x10] sm:$0xff]  ;;  %v3862_v18 = vld [vmem:[%s5292_s6 + $0x58] sm:$0xff] }
 0x2f4   : > { %v3861_v22 = vld [vmem:[%s5292_s6 + $0x50] sm:$0xff]  ;;  %v3870_v23 = vld [vmem:[%s5292_s6 + $0x98] sm:$0xff] }
 0x2f5   : > { %v1997_v44 = vadd.f32 %v1993_v29, %v1987_v28  ;;  %v1998_v62 = vadd.f32 %v1994_v34, %v1988_v32  ;;  %2345 = vmatpush.bf16.msra.mxu3 %v3870_v23  ;;  %v3878_v28 = vld [vmem:[%s5292_s6 + $0xd8] sm:$0xff] }
 0x2f6   : > { %2446 = vmatpush.bf16.msrb.mxu2 %v3884_v8  ;;  %2238 = vmatpush.bf16.msra.mxu0 %v3862_v18 }
 0x2f7   : > { %v2001_v0 = vmax.f32 %v1997_v44, 0.0  ;;  %v2002_v1 = vmax.f32 %v1998_v62, 0.0  ;;  %2127 = vmatpush.bf16.msra.mxu1 %v3856_v61  ;;  %v3900_v61 = vld [vmem:[%s5294_s8 + $0x20] sm:$0xff] }
 0x2f8   : > { %v1942_v41 = vpop.f32.mrf.mxu3  ;;  %v1970_v42 = vpop.f32.mrf.mxu2 }
 0x2f9   : > { %v1957_v45 = vadd.f32 %v1956_v31, %v1942_v41  ;;  %v1985_v47 = vadd.f32 %v1984_v36, %v1970_v42  ;;  %v2009_v53 = vrot.slane %v2001_v0, 1  ;;  %v2012_v54 = vrot.slane %v2002_v1, 1  ;;  %2346 = vmatpush.bf16.msra.mxu3 %v3869_v27  ;;  %v3886_v31 = vld [vmem:[%s5292_s6 + $0x118] sm:$0xff]  ;;  %v3895_v36 = vld [vmem:[%s5292_s6 + $0x160] sm:$0xff] }
 0x2fa   : > { %2447 = vmatpush.bf16.msrb.mxu2 %v3883_v38  ;;  %2239 = vmatpush.bf16.msra.mxu0 %v3861_v22  ;;  %v3894_v42 = vld [vmem:[%s5292_s6 + $0x158] sm:$0xff]  ;;  %v3898_v38 = vld [vmem:[%s5294_s8 + $0x10] sm:$0xff] }
 0x2fb   : > { %v1989_v4 = vadd.f32 %v1957_v45, %v1790_v39  ;;  %v1990_v58 = vadd.f32 %v1985_v47, %v1791_v40  ;;  %2128 = vmatpush.bf16.msra.mxu1 %v3855_v33  ;;  %v3906_v27 = vld [vmem:[%s5296_s10 + $0x18] sm:$0xff] }
 0x2fd   : > { %v1999_v48 = vadd.f32 %v1993_v29, %v1989_v4  ;;  %v2000_v49 = vadd.f32 %v1994_v34, %v1990_v58  ;;  %v3877_v29 = vld [vmem:[%s5292_s6 + $0xd0] sm:$0xff]  ;;  %v3892_v58 = vld [vmem:[%s5292_s6 + $0x148] sm:$0xff] }
 0x2fe   : > { %2448 = vmatpush.bf16.msrb.mxu2 %v3882_v30  ;;  %2240 = vmatpush.bf16.msra.mxu0 %v3860_v26  ;;  %v3893_v4 = vld [vmem:[%s5292_s6 + $0x150] sm:$0xff]  ;;  %v3896_v30 = vld [vmem:[%s5294_s8] sm:$0xff] }
 0x2ff   : > { %v2003_v51 = vmax.f32 %v1999_v48, 0.0  ;;  %v2004_v52 = vmax.f32 %v2000_v49, 0.0  ;;  %2129 = vmatpush.bf16.msra.mxu1 %v3854_v13  ;;  %v3890_v49 = vld [vmem:[%s5292_s6 + $0x138] sm:$0xff] }
 0x301   : > { %v2010_v55 = vrot.slane %v2003_v51, 1  ;;  %v2013_v57 = vrot.slane %v2004_v52, 1 }
 0x302   : > { %2449 = vmatpush.bf16.msrb.mxu2 %v3881_v16  ;;  %2465 = vmatpush.bf16.msrb.mxu0 %v3886_v31  ;;  %v2673_v16 = vld [vmem:[%s5296_s10 + $0x28] sm:$0x3] }
 0x303   : > { %v5052_v59 = vmax.f32 %v2004_v52, %v2013_v57  ;;  %v2014_v60 = vsel %vm577_vm2, %v2012_v54, %v2013_v57  ;;  %v2011_v50 = vsel %vm577_vm2, %v2009_v53, %v2010_v55  ;;  %v5063_v3 = vmax.f32 %v2003_v51, %v2010_v55  ;;  %2130 = vmatpush.bf16.msra.mxu1 %v3853_v17  ;;  %v3889_v54 = vld [vmem:[%s5292_s6 + $0x130] sm:$0xff]  ;;  %v3888_v55 = vld [vmem:[%s5292_s6 + $0x128] sm:$0xff] }
 0x304   : > { %v5056_v63 = vmax.f32 %v2002_v1, %v2014_v60  ;;  %v5058_v2 = vmax.f32 %v2001_v0, %v2011_v50  ;;  %v3891_v1 = vld [vmem:[%s5292_s6 + $0x140] sm:$0xff]  ;;  %v2696_v18 = vunpack.c.l.b16 %v2673_v16 }
 0x305   : > { %2033 = vrot.lane.b32.xlu1 %v5052_v59, %s4031_s29  ;;  %v3887_v60 = vld [vmem:[%s5292_s6 + $0x120] sm:$0xff] }
 0x306   : > { %2029 = vrot.lane.b32.xlu2 %v5056_v63, %s4031_s29  ;;  %2027 = vrot.lane.b32.xlu0 %v5058_v2, %s4031_s29  ;;  %v2702_v19 = vpack.c.b16 %v2696_v18, %v2696_v18 }
 0x307   : > { %2450 = vmatpush.bf16.msrb.mxu2 %v3880_v20  ;;  %2131 = vmatpush.bf16.msra.mxu1 %v3852_v21  ;;  %v3907_v21 = vld [vmem:[%s5296_s10 + $0x20] sm:$0xff] }
 0x308   : > { %v2714_v20 = vsel %vm2712_vm13, %v2702_v19, 0 }
 0x30b   : > { %2451 = vmatpush.bf16.msrb.mxu2 %v3879_v24  ;;  %2132 = vmatpush.bf16.msra.mxu1 %v3851_v25 }
 0x30e   : > { %2031 = vrot.lane.b32.xlu2 %v5063_v3, %s4031_s29  ;;  %s404_s29 = sand.u32 1, %s4020_s22  }
 0x30f   : > { %2452 = vmatpush.bf16.msrb.mxu2 %v3878_v28  ;;  %2359 = vmatpush.bf16.msrb.mxu1 %v3877_v29  ;;  %v2046_v28 = vld [vmem:[%s5293_s7] sm:$0x1]  ;;  %s405_s18 = scalar_lea.vmem [#allocation2], %s404_s29  ;;  %s2732_s26 = scalar_lea.sflag [#allocation3], %s404_s29 }
 0x310   : > { %s2742_s19 = sshll.u32 %s405_s18, 4  ;;  %s2743_s19 = int_to_ptr.vmem [resolvable:$true] %s2742_s19 }
 0x360   : > { %v2030_v32 = vpop.permute.xlu2 %2029 }
 0x361   : > { %v2043_v34 = vmax.f32 %v5056_v63, %v2030_v32 }
 0x363   : > { %v2048_v35 = vpack.c.bf16 %v2043_v34, %v2043_v34  ;;  %v3905_v34 = vld [vmem:[%s5296_s10 + $0x10] sm:$0xff] }
 0x365   : > { %v2174_v56 = vrot.slane %v2048_v35, 1  ;;  %3457 = vmatmul.msk.bf16.vlgmr.msrb.gmra.mxu3 %vm2121_vm10, %v2048_v35  ;;  %v2280_v51 = vrot.slane %v2048_v35, 2  ;;  %v2386_v52 = vrot.slane %v2048_v35, 3 }
 0x366   : > { %2570 = vmatpush.bf16.msrb.mxu3 %v3895_v36 }
 0x367   : > { %3512 = vmatmul.msk.bf16.vlgmr.msra.gmra.mxu2 %vm2121_vm10, %v2174_v56 }
 0x368   : > { %v2032_v57 = vpop.permute.xlu2 %2031  ;;  %2718 = vmatpush.bf16.msra.mxu2 %v2714_v20 }
 0x36c   : > { %2719 = vmatpush.bf16.msra.mxu2 %v3907_v21 }
 0x370   : > { %2720 = vmatpush.bf16.msra.mxu2 %v3906_v27 }
 0x374   : > { %2721 = vmatpush.bf16.msra.mxu2 %v3905_v34 }
 0x377   : > { %v2034_v0 = vpop.permute.xlu1 %2033 }
 0x378   : > { %v2028_v39 = vpop.permute.xlu0 %2027  ;;  %v2045_v48 = vmax.f32 %v5052_v59, %v2034_v0  ;;  %v2037_v59 = vsel %vm2035_vm11, %v2032_v57, %v2034_v0  ;;  %v2674_v57 = vld [vmem:[%s5297_s11] sm:$0x1] }
 0x379   : > { %v2036_v40 = vsel %vm2035_vm11, %v2028_v39, %v2030_v32  ;;  %v2044_v50 = vmax.f32 %v5063_v3, %v2037_v59  ;;  %v3901_v3 = vld [vmem:[%s5294_s8 + $0x28] sm:$0xff] }
 0x37a   : > { %v2042_v41 = vmax.f32 %v5058_v2, %v2036_v40  ;;  %v2473_v53 = vpack.c.bf16 %v2045_v48, %v2045_v48  ;;  %v2593_v2 = vld [vmem:[%s5294_s8 + $0x38] sm:$0xf]  ;;  %v3903_v48 = vld [vmem:[%s5296_s10] sm:$0xff] }
 0x37b   : > { %v2472_v63 = vpack.c.bf16 %v2044_v50, %v2044_v50  ;;  %v2624_v5 = vunpack.c.l.b16 %v2593_v2 }
 0x37c   : > { %v2047_v44 = vpack.c.bf16 %v2042_v41, %v2042_v41 }
 0x37d   : > { %v2632_v37 = vpack.c.b16 %v2624_v5, %v2624_v5 }
 0x37e   : > { %v2279_v62 = vrot.slane %v2047_v44, 2  ;;  %2133 = vmatmul.bf16.vlgmr.msra.gmra.mxu1 %v2047_v44  ;;  %v2173_v45 = vrot.slane %v2047_v44, 1  ;;  %v2385_v47 = vrot.slane %v2047_v44, 3 }
 0x37f   : > { %2550 = vmatpush.bf16.msra.mxu1 %v3894_v42  ;;  %v2646_v46 = vsel %vm2644_vm12, %v2632_v37, 0 }
 0x380   : > { %2241 = vmatmul.bf16.vlgmr.msra.gmra.mxu0 %v2173_v45  ;;  %2347 = vmatmul.bf16.vlgmr.msra.gmra.mxu3 %v2279_v62 }
 0x381   : > { %2453 = vmatmul.bf16.vlgmr.msrb.gmra.mxu2 %v2385_v47  ;;  %2648 = vmatpush.bf16.msra.mxu0 %v2646_v46 }
 0x383   : > { %2551 = vmatpush.bf16.msra.mxu1 %v3893_v4 }
 0x385   : > { %2649 = vmatpush.bf16.msra.mxu0 %v3902_v7 }
 0x387   : > { %2552 = vmatpush.bf16.msra.mxu1 %v3892_v58 }
 0x389   : > { %2650 = vmatpush.bf16.msra.mxu0 %v3901_v3 }
 0x38b   : > { %2553 = vmatpush.bf16.msra.mxu1 %v3891_v1  ;;  %v3904_v1 = vld [vmem:[%s5296_s10 + $0x8] sm:$0xff] }
 0x38c   : > { %2722 = vmatpush.bf16.msra.mxu2 %v3904_v1 }
 0x38d   : > { %2651 = vmatpush.bf16.msra.mxu0 %v3900_v61 }
 0x38e   : > { %3567 = vmatmul.msk.bf16.vlgmr.msrb.gmra.mxu1 %vm2121_vm10, %v2280_v51 }
 0x38f   : > { %2554 = vmatpush.bf16.msra.mxu1 %v3890_v49  ;;  %v2594_v49 = vld [vmem:[%s5295_s9] sm:$0x1] }
 0x390   : > { %3622 = vmatmul.msk.bf16.vlgmr.msrb.gmra.mxu0 %vm2121_vm10, %v2386_v52  ;;  %3677 = vmatmul.msk.bf16.vlgmr.msrb.gmra.mxu3 %vm2121_vm10, %v2473_v53 }
 0x391   : > { %2652 = vmatpush.bf16.msra.mxu0 %v3899_v10  ;;  %2723 = vmatpush.bf16.msra.mxu2 %v3903_v48 }
 0x393   : > { %2555 = vmatpush.bf16.msra.mxu1 %v3889_v54 }
 0x395   : > { %2653 = vmatpush.bf16.msra.mxu0 %v3898_v38 }
 0x397   : > { %2556 = vmatpush.bf16.msra.mxu1 %v3888_v55 }
 0x399   : > { %2654 = vmatpush.bf16.msra.mxu0 %v3897_v12 }
 0x39b   : > { %2557 = vmatpush.bf16.msra.mxu1 %v3887_v60 }
 0x39d   : > { %2655 = vmatpush.bf16.msra.mxu0 %v3896_v30 }
 0x39e   : > { %2558 = vmatmul.bf16.vlgmr.msra.gmra.mxu1 %v2472_v63 }
 0x3e8   : > { %v2147_v6 = vpop.f32.mrf.mxu3 }
 0x3ea   : > { %v2255_v43 = vpop.f32.mrf.mxu2 }
 0x3f0   : > { %v2149_v8 = vpop.f32.mrf.mxu3 }
 0x3f2   : > { %v2257_v9 = vpop.f32.mrf.mxu2 }
 0x3fb   : > { %v2134_v33 = vpop.f32.mrf.mxu1 }
 0x3fc   : > { %v2148_v26 = vadd.f32 %v2147_v6, %v2134_v33 }
 0x3fd   : > { %v2242_v11 = vpop.f32.mrf.mxu0 }
 0x3fe   : > { %v2151_v29 = vadd.f32 %v2148_v26, %v2046_v28  ;;  %v2256_v32 = vadd.f32 %v2255_v43, %v2242_v11 }
 0x400   : > { %v2259_v39 = vadd.f32 %v2256_v32, %v2151_v29 }
 0x403   : > { %v2136_v13 = vpop.f32.mrf.mxu1  ;;  %v2348_v14 = vpop.f32.mrf.mxu3 }
 0x404   : > { %v2454_v15 = vpop.f32.mrf.mxu2 }
 0x405   : > { %v2244_v17 = vpop.f32.mrf.mxu0 }
 0x40b   : > { %v2350_v22 = vpop.f32.mrf.mxu3  ;;  %v2361_v23 = vpop.f32.mrf.mxu1 }
 0x40c   : > { %v2456_v24 = vpop.f32.mrf.mxu2  ;;  %v2362_v31 = vadd.f32 %v2361_v23, %v2348_v14 }
 0x40d   : > { %v2467_v25 = vpop.f32.mrf.mxu0 }
 0x40e   : > { %v2365_v40 = vadd.f32 %v2362_v31, %v2259_v39  ;;  %v2468_v41 = vadd.f32 %v2467_v25, %v2454_v15 }
 0x410   : > { %v2471_v62 = vadd.f32 %v2468_v41, %v2365_v40 }
 0x413   : > { %v2363_v35 = vpop.f32.mrf.mxu1  ;;  %v2572_v56 = vpop.f32.mrf.mxu3 }
 0x415   : > { %v2469_v36 = vpop.f32.mrf.mxu0 }
 0x41b   : > { %v2559_v42 = vpop.f32.mrf.mxu1  ;;  %v2574_v44 = vpop.f32.mrf.mxu3 }
 0x41c   : > { %v2573_v45 = vadd.f32 %v2572_v56, %v2559_v42 }
 0x41e   : > { %v2576_v47 = vadd.f32 %v2573_v45, %v2471_v62 }
 0x420   : > { %v2577_v4 = vmax.f32 %v2576_v47, 0.0 }
 0x422   : > { %v2578_v58 = vpack.c.bf16 %v2577_v4, %v2577_v4 }
 0x423   : > { %v2561_v0 = vpop.f32.mrf.mxu1 }
 0x424   : > { %3706 = vmatmul.msk.bf16.vlgmr.msra.gmra.mxu0 %vm2640_vm14, %v2578_v58 }
 0x4a1   : > { %v2657_v51 = vpop.f32.mrf.mxu0 }
 0x4a2   : > { %v2658_v52 = vadd.f32 %v2657_v51, %v2594_v49 }
 0x4a4   : > { %v2661_v53 = vmax.f32 %v2658_v52, 0.0 }
 0x4a6   : > { %v2662_v54 = vpack.c.bf16 %v2661_v53, %v2661_v53 }
 0x4a8   : > { %3727 = vmatmul.msk.bf16.vlgmr.msra.gmra.mxu2 %vm2708_vm15, %v2662_v54 }
 0x4a9   : > { %v2659_v55 = vpop.f32.mrf.mxu0 }
 0x52b   : > { %v2725_v59 = vpop.f32.mrf.mxu2 }
 0x52c   : > { %v2726_v60 = vadd.f32 %v2725_v59, %v2674_v57 }
 0x52e   : > { %2730 = vst.msk [vmem:[%s405_s18] sm:$0x1] %vm2729_vm0, %v2726_v60 }
 0x52f   : > { %3993 = shalt.err (!%p3990_p3)
}
 0x530   : > { %3910 = dma.vmem_to_hbm [thread:$0]  (%p4135_p5), %s2743_s19, 16, %s2745_s20, %s2732_s26  }
 0x533   : > { %v2727_v50 = vpop.f32.mrf.mxu2 }
 0x534 PF: > { %p3916_p4 = scmp.ge.s32.totalorder %s4028_s24, 2  ;;  %s2756_s15 = sand.u32 1, %s4016_s21  }
 0x535   : > { %s2757_s16 = scalar_lea.sflag [#allocation3], %s2756_s15 }
 0x536   : > { %p3913_p7 = pnand %p3916_p4, %p4139_p6 }
 0x538   : > { %p3914_p8 = pneg %p3913_p7 }
 0x53a   : > { %4011 = dma.done.wait (%p3914_p8), %s2757_s16, 16  }
 0x53b   : > { %4013 = vsyncadd (%p3914_p8), %s2757_s16, 4294967280  ;;  %s5310_s24 = sld [smem:[#allocation6_spill]]  ;;  %s5313_s21 = smov %s4020_s22 }
 0x53c   : > { %s5311_s18 = sld [smem:[#allocation5_spill]] }
 0x53d   : > { %s5312_s23 = sld [smem:[#allocation7_spill]] }
 0x541   : > { %p22_p9 = scmp.ge.s32.totalorder %s5310_s24, 4  }
 0x542   : > { %s5314_s22 = smov %s5311_s18 }
 0x543   :  { %24 = sbr.rel (!%p22_p9) target bundleno = 3 (0x3), region = 115 }
 0x548   :  { %2762 = vsyncpa [#allocation3], 1 }
 0x549   :  { %2764 = vsyncpa [#allocation3 + $0x1], 1 }

</bundles_post_ra>
